<compile_context>
chip_gen: v7x
topology: tpu7x:2x2x1
jax: 0.10.0
libtpu: 0.0.40
codegen_flags: <defaults>
</compile_context>

<pallas_src>
import functools
import itertools

import jax
import jax.numpy as jnp
from jax.experimental import pallas as pl
from jax.experimental.pallas import tpu as pltpu


BOTTLENECK_CFG = ((64, 3, 1), (128, 4, 2), (256, 6, 2), (512, 3, 2))

_VMEM_BUDGET = 14 * 1024 * 1024          # per-call tile budget (double-buffered)
_VMEM_LIMIT = 48 * 1024 * 1024           # explicit scoped-VMEM limit (v5e default is 16 MiB)


# ----------------------------------------------------------------------------
# Helpers
# ----------------------------------------------------------------------------
def _round_up(x, m):
    return ((x + m - 1) // m) * m


def _phys(c):
    """Physical channel width an activation with `c` logical channels carries."""
    return c if c < 64 else _round_up(c, 128)


# ----------------------------------------------------------------------------
# Pallas kernel 1: tiled matmul with fused bias, optional residual, optional
# ReLU.   out = act( (A @ B) + bias[col] (+ residual) )
# A: bf16 im2col activations, B: bf16 BN-folded weights, f32 accumulator.
# ----------------------------------------------------------------------------
def _mm_kernel(a_ref, b_ref, bias_ref, *rest, relu, has_res):
    if has_res:
        res_ref, o_ref, acc_ref = rest
    else:
        res_ref = None
        o_ref, acc_ref = rest

    k = pl.program_id(2)

    @pl.when(k == 0)
    def _():
        acc_ref[...] = jnp.zeros_like(acc_ref)

    acc_ref[...] += jnp.dot(a_ref[...], b_ref[...],
                            preferred_element_type=jnp.float32)

    @pl.when(k == pl.num_programs(2) - 1)
    def _():
        out = acc_ref[...] + bias_ref[...]
        if has_res:
            out = out + res_ref[...].astype(jnp.float32)
        if relu:
            out = jnp.maximum(out, 0.0)
        o_ref[...] = out.astype(o_ref.dtype)


def _pick_tiles(Mp, K, Np, has_res):
    """Pick (tm, tk, tn) minimizing grid steps under a VMEM tile budget."""
    tn = 256 if Np % 256 == 0 else 128

    tm_cands = [Mp] + [t for t in (4096, 2048, 1024, 512, 256, 128, 64, 32, 16)
                       if Mp % t == 0 and t < Mp]
    tk_cands = [K] + [t for t in (4608, 2304, 2048, 1536, 1152, 1024,
                                  768, 512, 384, 256, 128)
                      if K % t == 0 and t < K]

    def usage(tm_, tk_):
        dbuf = (tm_ * tk_ * 2 + tk_ * tn * 2 + tm_ * tn * 2
                + (tm_ * tn * 2 if has_res else 0) + tn * 4)
        return 2 * dbuf + tm_ * tn * 4          # + f32 accumulator scratch

    best = None
    for tk_ in tk_cands:
        for tm_ in tm_cands:
            if usage(tm_, tk_) > _VMEM_BUDGET:
                continue
            key = ((Mp // tm_) * (Np // tn) * (K // tk_), -tk_, -tm_)
            if best is None or key < best[0]:
                best = (key, tm_, tk_)
    assert best is not None
    _, tm, tk = best

    # Keep >=2 steps on the 'parallel' axes so v7x's second TensorCore is used.
    if Mp // tm == 1 and Np // tn == 1:
        if tn == 256:
            tn = 128
        elif Mp >= 32 and (Mp // 2) % 16 == 0:
            tm = Mp // 2
    return tm, tk, tn


@functools.partial(jax.jit, static_argnames=("relu", "n_out", "out_dtype"))
def matmul_bias_act(a, b, bias, residual=None, *, relu, n_out,
                    out_dtype=jnp.bfloat16):
    """a: (M, K) bf16; b: (K, Np) bf16 (Np % 128 == 0); bias: (1, Np) f32;
    residual: optional (M, Np) bf16 -> out (M, n_out)."""
    M, K = a.shape
    Kb, Np = b.shape
    assert K == Kb, (K, Kb)
    assert Np % 128 == 0, Np

    Mp = _round_up(M, 16)                        # bf16 packs 16 rows / vreg
    if Mp != M:
        a = jnp.pad(a, ((0, Mp - M), (0, 0)))

    has_res = residual is not None
    tm, tk, tn = _pick_tiles(Mp, K, Np, has_res)

    operands = [a, b, bias]
    in_specs = [
        pl.BlockSpec((tm, tk), lambda i, j, k: (i, k)),
        pl.BlockSpec((tk, tn), lambda i, j, k: (k, j)),
        pl.BlockSpec((1, tn), lambda i, j, k: (0, j)),
    ]
    if has_res:
        r = residual.astype(jnp.bfloat16)
        assert r.shape[1] == Np, (r.shape, Np)
        if r.shape[0] != Mp:
            r = jnp.pad(r, ((0, Mp - r.shape[0]), (0, 0)))
        operands.append(r)
        in_specs.append(pl.BlockSpec((tm, tn), lambda i, j, k: (i, j)))

    out = pl.pallas_call(
        functools.partial(_mm_kernel, relu=relu, has_res=has_res),
        out_shape=jax.ShapeDtypeStruct((Mp, Np), out_dtype),
        grid_spec=pltpu.PrefetchScalarGridSpec(
            num_scalar_prefetch=0,
            grid=(Mp // tm, Np // tn, K // tk),
            in_specs=in_specs,
            out_specs=pl.BlockSpec((tm, tn), lambda i, j, k: (i, j)),
            scratch_shapes=[pltpu.VMEM((tm, tn), jnp.float32)],
        ),
        compiler_params=pltpu.CompilerParams(
            dimension_semantics=("parallel", "parallel", "arbitrary"),
            vmem_limit_bytes=_VMEM_LIMIT,
        ),
    )(*operands)

    if Mp != M or n_out != Np:
        out = out[:M, :n_out]
    return out


# ----------------------------------------------------------------------------
# Pallas kernel 2: max-pool reduction over the leading (tap) axis, tiled over M
#   patches: (9, M, C) -> (M, C)
# ----------------------------------------------------------------------------
def _maxpool_kernel(x_ref, o_ref):
    acc = x_ref[0]
    for i in range(1, x_ref.shape[0]):
        acc = jnp.maximum(acc, x_ref[i])
    o_ref[...] = acc


@jax.jit
def _maxpool_reduce(p):
    KK, M, C = p.shape
    Mp = _round_up(M, 16)
    if Mp != M:
        p = jnp.pad(p, ((0, 0), (0, Mp - M), (0, 0)))
    if Mp <= 1024:
        tm = Mp
    else:
        tm = next(t for t in (1024, 512, 256, 128, 64, 32, 16) if Mp % t == 0)
    out = pl.pallas_call(
        _maxpool_kernel,
        out_shape=jax.ShapeDtypeStruct((Mp, C), p.dtype),
        grid_spec=pltpu.PrefetchScalarGridSpec(
            num_scalar_prefetch=0,
            grid=(Mp // tm,),
            in_specs=[pl.BlockSpec((KK, tm, C), lambda i: (0, i, 0))],
            out_specs=pl.BlockSpec((tm, C), lambda i: (i, 0)),
        ),
        compiler_params=pltpu.CompilerParams(dimension_semantics=("parallel",)),
    )(p)
    return out[:M] if Mp != M else out


# ----------------------------------------------------------------------------
# Pallas kernel 3: global average pool, single un-gridded call
#   x: (B, HW, C) bf16 -> (B, C) f32
# ----------------------------------------------------------------------------
def _gap_kernel(x_ref, o_ref, *, inv_hw):
    o_ref[...] = jnp.sum(x_ref[...].astype(jnp.float32), axis=1) * inv_hw


@jax.jit
def _gap_reduce(x3):
    B, HW, C = x3.shape
    return pl.pallas_call(
        functools.partial(_gap_kernel, inv_hw=1.0 / HW),
        out_shape=jax.ShapeDtypeStruct((B, C), jnp.float32),
    )(x3)


# ----------------------------------------------------------------------------
# JAX glue: shifted strided windows (NHWC) for im2col / pooling
# ----------------------------------------------------------------------------
def _shifted_windows(x, kh, kw, stride, pad):
    xp = jnp.pad(x, ((0, 0), (pad, pad), (pad, pad), (0, 0)))
    Hp, Wp = xp.shape[1], xp.shape[2]
    OH = (Hp - kh) // stride + 1
    OW = (Wp - kw) // stride + 1
    cols = []
    for i in range(kh):
        for j in range(kw):
            cols.append(
                xp[:, i:i + stride * (OH - 1) + 1:stride,
                      j:j + stride * (OW - 1) + 1:stride, :])
    return cols, OH, OW


# ----------------------------------------------------------------------------
# Layer building blocks
# ----------------------------------------------------------------------------
def conv_bn_act(x, cp, kh, kw, stride, pad, relu, residual=None):
    """x: (B,H,W,Cin_phys) bf16 NHWC; cp: {'w': (K,Np) bf16, 'b': (1,Np) f32}.
    Returns (B,OH,OW,Np) bf16 -- the full physical (128-padded) channel width
    is carried forward (no slice copy)."""
    B, H, W, Cin = x.shape
    Np = cp["w"].shape[1]
    if kh == 1 and kw == 1 and pad == 0:
        xs = x[:, ::stride, ::stride, :] if stride != 1 else x
        _, OH, OW, _ = xs.shape
        a = xs.reshape(B * OH * OW, Cin)             # no im2col for 1x1
    else:
        # TODO(synk): replace with a tap-accumulating direct-conv kernel
        # (manual DMA from pl.ANY) to avoid materializing the kh*kw im2col copy.
        cols, OH, OW = _shifted_windows(x, kh, kw, stride, pad)
        patches = jnp.stack(cols, axis=3)            # (B,OH,OW,kh*kw,Cin) bf16
        a = patches.reshape(B * OH * OW, kh * kw * Cin)
    assert a.shape[1] == cp["w"].shape[0], (a.shape, cp["w"].shape)
    out = matmul_bias_act(a, cp["w"], cp["b"], residual,
                          relu=relu, n_out=Np, out_dtype=jnp.bfloat16)
    return out.reshape(B, OH, OW, Np)


def maxpool3x3_s2(x):
    # Zero padding equals -inf padding here ONLY because the stem output is
    # post-ReLU (x >= 0); padded channels are exactly zero and stay zero.
    B, H, W, C = x.shape
    cols, OH, OW = _shifted_windows(x, 3, 3, 2, 1)
    p = jnp.stack(cols, axis=0).reshape(9, B * OH * OW, C)   # tap-major, C=128
    out = _maxpool_reduce(p)
    return out.reshape(B, OH, OW, C)


def bottleneck(x, blk, stride):
    if blk["down"] is not None:
        identity = conv_bn_act(x, blk["down"], 1, 1, stride, 0, False)
    else:
        identity = x
    out = conv_bn_act(x, blk["c1"], 1, 1, 1, 0, True)
    out = conv_bn_act(out, blk["c2"], 3, 3, stride, 1, True)
    B, OH, OW, C = identity.shape
    res2d = identity.reshape(B * OH * OW, C)
    # residual add + ReLU fused into conv3's matmul epilogue
    out = conv_bn_act(out, blk["c3"], 1, 1, 1, 0, True, residual=res2d)
    return out


def global_avg_pool(x):
    B, H, W, C = x.shape
    return _gap_reduce(x.reshape(B, H * W, C))       # (B, C) float32


# ----------------------------------------------------------------------------
# Full forward pass (matches ResNet50 module forward)
# ----------------------------------------------------------------------------
def resnet50_forward(params, x_nchw, training=False):
    x = jnp.transpose(x_nchw, (0, 2, 3, 1)).astype(jnp.bfloat16)  # NCHW->NHWC
    # stem: conv 7x7/2 + BN + ReLU, maxpool 3x3/2
    x = conv_bn_act(x, params["conv1"], 7, 7, 2, 3, True)
    x = maxpool3x3_s2(x)
    # layers 1-4
    for layer_params, (planes, nblocks, stride) in zip(params["layers"],
                                                       BOTTLENECK_CFG):
        for b in range(nblocks):
            s = stride if b == 0 else 1
            x = bottleneck(x, layer_params[b], s)
    # global average pool + flatten
    f = global_avg_pool(x)                           # (B, 2048) float32
    if not training:
        return f
    fc = params["fc"]
    y = matmul_bias_act(f.astype(jnp.bfloat16), fc["w"], fc["b"], None,
                        relu=False, n_out=fc["n"], out_dtype=jnp.float32)
    return y


# ----------------------------------------------------------------------------
# Deterministic parameter initialization + one-time inference preparation
# (pad Cin to the carried physical width, fold BN scale/shift, reshape to
#  (K, Np), cast bf16, pad N -- all done once at init, never per forward)
# ----------------------------------------------------------------------------
def _conv_w(key, kh, kw, cin, cout):
    std = (2.0 / (kh * kw * cin)) ** 0.5
    return std * jax.random.normal(key, (kh, kw, cin, cout), jnp.float32)


def _bn_params(key, c):
    k1, k2, k3, k4 = jax.random.split(key, 4)
    gamma = 1.0 + 0.1 * jax.random.normal(k1, (c,), jnp.float32)
    beta = 0.05 * jax.random.normal(k2, (c,), jnp.float32)
    mean = 0.05 * jax.random.normal(k3, (c,), jnp.float32)
    var = 1.0 + 0.1 * jax.random.uniform(k4, (c,), jnp.float32)
    return (gamma, beta, mean, var)


def _prep_conv(w, bn, cin_phys):
    KH, KW, Cin, Cout = w.shape
    gamma, beta, mean, var = bn
    scale = gamma * jax.lax.rsqrt(var + 1e-5)
    shift = beta - mean * scale
    w = w * scale[None, None, None, :]               # fold BN scale
    if cin_phys != Cin:                              # zero rows for carried pad
        w = jnp.pad(w, ((0, 0), (0, 0), (0, cin_phys - Cin), (0, 0)))
    K = KH * KW * cin_phys
    Np = _round_up(Cout, 128)
    bmat = jnp.pad(w.reshape(K, Cout),
                   ((0, 0), (0, Np - Cout))).astype(jnp.bfloat16)
    bias = jnp.pad(shift, (0, Np - Cout)).reshape(1, Np).astype(jnp.float32)
    return {"w": bmat, "b": bias}


def init_params(key, num_classes):
    counter = itertools.count()

    def nk():
        return jax.random.fold_in(key, next(counter))

    params = {"conv1": _prep_conv(_conv_w(nk(), 7, 7, 3, 64),
                                  _bn_params(nk(), 64), cin_phys=3)}
    layers = []
    in_planes = 64
    for planes, nblocks, stride in BOTTLENECK_CFG:
        blocks = []
        for b in range(nblocks):
            s = stride if b == 0 else 1
            blk = {
                "c1": _prep_conv(_conv_w(nk(), 1, 1, in_planes, planes),
                                 _bn_params(nk(), planes),
                                 cin_phys=_phys(in_planes)),
                "c2": _prep_conv(_conv_w(nk(), 3, 3, planes, planes),
                                 _bn_params(nk(), planes),
                                 cin_phys=_phys(planes)),
                "c3": _prep_conv(_conv_w(nk(), 1, 1, planes, planes * 4),
                                 _bn_params(nk(), planes * 4),
                                 cin_phys=_phys(planes)),
            }
            if s != 1 or in_planes != planes * 4:
                blk["down"] = _prep_conv(
                    _conv_w(nk(), 1, 1, in_planes, planes * 4),
                    _bn_params(nk(), planes * 4),
                    cin_phys=_phys(in_planes))
            else:
                blk["down"] = None
            blocks.append(blk)
            in_planes = planes * 4
        layers.append(blocks)
    params["layers"] = layers

    wfc = (1.0 / (2048.0 ** 0.5)) * jax.random.normal(
        nk(), (num_classes, 2048), jnp.float32)
    bfc = 0.01 * jax.random.normal(nk(), (num_classes,), jnp.float32)
    npc = _round_up(num_classes, 128)
    params["fc"] = {
        "w": jnp.pad(wfc.T, ((0, 0), (0, npc - num_classes))).astype(jnp.bfloat16),
        "b": jnp.pad(bfc, (0, npc - num_classes)).reshape(1, npc).astype(jnp.float32),
        "n": num_classes,
    }
    return params


# ----------------------------------------------------------------------------
# Main
# ----------------------------------------------------------------------------
if __name__ == "__main__":
    key = jax.random.PRNGKey(0)
    num_classes = 10
    params = init_params(jax.random.fold_in(key, 1), num_classes)

    # small input consistent with the module: NCHW, 3 channels
    x = jax.random.normal(jax.random.fold_in(key, 2), (2, 3, 64, 64), jnp.float32)

    # eval branch: returns pooled features f of shape (B, 2048)
    f = resnet50_forward(params, x, training=False)
    f = jax.block_until_ready(f)
    assert f.shape == (2, 2048), f.shape

    # training branch: returns classifier logits y of shape (B, num_classes)
    y = resnet50_forward(params, x, training=True)
    y = jax.block_until_ready(y)
    assert y.shape == (2, num_classes), y.shape

    print("KERNEL_OK")
</pallas_src>

<mosaic_0001>
module attributes {stable_mosaic.version = 11 : i64} {
  func.func @_mm_kernel(%arg0: i32, %arg1: i32, %arg2: i32, %arg3: memref<1024x147xbf16, #tpu.memory_space<vmem>>, %arg4: memref<147x128xbf16, #tpu.memory_space<vmem>>, %arg5: memref<1x128xf32, #tpu.memory_space<vmem>>, %arg6: memref<1024x128xbf16, #tpu.memory_space<vmem>>, %arg7: memref<1024x128xf32, #tpu.memory_space<vmem>>) attributes {dimension_semantics = [#tpu.dimension_semantics<parallel>, #tpu.dimension_semantics<parallel>, #tpu.dimension_semantics<arbitrary>], iteration_bounds = array<i64: 2, 1, 1>, scalar_prefetch = 0 : i64, scratch_operands = 1 : i64, tpu.core_type = #tpu.core_type<tc>, window_params = [{transform_indices = @transform_0, window_bounds = array<i64: 1024, 147>}, {transform_indices = @transform_1, window_bounds = array<i64: 147, 128>}, {transform_indices = @transform_2, window_bounds = array<i64: 1, 128>}, {transform_indices = @transform_3, window_bounds = array<i64: 1024, 128>}]} {
    %c0_i32 = arith.constant 0 : i32
    %0 = arith.cmpi eq, %arg2, %c0_i32 : i32
    %1 = arith.extui %0 : i1 to i32
    %c0_i32_0 = arith.constant 0 : i32
    %2 = arith.cmpi ne, %1, %c0_i32_0 : i32
    scf.if %2 {
      %cst_10 = arith.constant 0.000000e+00 : f32
      %12 = vector.broadcast %cst_10 : f32 to vector<1024x128xf32>
      %c0_11 = arith.constant 0 : index
      %c0_12 = arith.constant 0 : index
      %13 = vector.load %arg7[%c0_11, %c0_12] : memref<1024x128xf32, #tpu.memory_space<vmem>>, vector<1024x128xf32>
      tpu.vector_store %arg7[%c0_11, %c0_12], %12 {strides = array<i32>} : memref<1024x128xf32, #tpu.memory_space<vmem>>, vector<1024x128xf32>,
    } else {
    }
    %c0 = arith.constant 0 : index
    %c0_1 = arith.constant 0 : index
    %3 = vector.load %arg7[%c0, %c0_1] : memref<1024x128xf32, #tpu.memory_space<vmem>>, vector<1024x128xf32>
    %c0_2 = arith.constant 0 : index
    %c0_3 = arith.constant 0 : index
    %4 = vector.load %arg3[%c0_2, %c0_3] : memref<1024x147xbf16, #tpu.memory_space<vmem>>, vector<1024x147xbf16>
    %c0_4 = arith.constant 0 : index
    %c0_5 = arith.constant 0 : index
    %5 = vector.load %arg4[%c0_4, %c0_5] : memref<147x128xbf16, #tpu.memory_space<vmem>>, vector<147x128xbf16>
    %cst = arith.constant dense<0.000000e+00> : vector<1024x128xf32>
    %6 = tpu.matmul %4, %5, %cst {dimension_numbers = #tpu.dot_dimension_numbers<[1], [0], [0], [1], [0, 0, 1, 1], [], []>} : vector<1024x147xbf16>, vector<147x128xbf16>, vector<1024x128xf32> -> vector<1024x128xf32>
    %7 = arith.addf %3, %6 : vector<1024x128xf32>
    %c0_6 = arith.constant 0 : index
    %c0_7 = arith.constant 0 : index
    %8 = vector.load %arg7[%c0_6, %c0_7] : memref<1024x128xf32, #tpu.memory_space<vmem>>, vector<1024x128xf32>
    tpu.vector_store %arg7[%c0_6, %c0_7], %7 {strides = array<i32>} : memref<1024x128xf32, #tpu.memory_space<vmem>>, vector<1024x128xf32>,
    %c0_i32_8 = arith.constant 0 : i32
    %9 = arith.cmpi eq, %arg2, %c0_i32_8 : i32
    %10 = arith.extui %9 : i1 to i32
    %c0_i32_9 = arith.constant 0 : i32
    %11 = arith.cmpi ne, %10, %c0_i32_9 : i32
    scf.if %11 {
      %c0_10 = arith.constant 0 : index
      %c0_11 = arith.constant 0 : index
      %12 = vector.load %arg7[%c0_10, %c0_11] : memref<1024x128xf32, #tpu.memory_space<vmem>>, vector<1024x128xf32>
      %c0_12 = arith.constant 0 : index
      %c0_13 = arith.constant 0 : index
      %13 = vector.load %arg5[%c0_12, %c0_13] : memref<1x128xf32, #tpu.memory_space<vmem>>, vector<1x128xf32>
      %14 = vector.broadcast %13 : vector<1x128xf32> to vector<1024x128xf32>
      %15 = arith.addf %12, %14 : vector<1024x128xf32>
      %cst_14 = arith.constant 0.000000e+00 : f32
      %16 = vector.broadcast %cst_14 : f32 to vector<1024x128xf32>
      %17 = arith.maximumf %15, %16 : vector<1024x128xf32>
      %18 = arith.truncf %17 : vector<1024x128xf32> to vector<1024x128xbf16>
      %c0_15 = arith.constant 0 : index
      %c0_16 = arith.constant 0 : index
      %19 = vector.load %arg6[%c0_15, %c0_16] : memref<1024x128xbf16, #tpu.memory_space<vmem>>, vector<1024x128xbf16>
      tpu.vector_store %arg6[%c0_15, %c0_16], %18 {strides = array<i32>} : memref<1024x128xbf16, #tpu.memory_space<vmem>>, vector<1024x128xbf16>,
    } else {
    }
    return
  }
  func.func @transform_0(%arg0: i32, %arg1: i32, %arg2: i32) -> (i32, i32) {
    %c0_i32 = arith.constant 0 : i32
    return %arg0, %arg2 : i32, i32
  }
  func.func @transform_1(%arg0: i32, %arg1: i32, %arg2: i32) -> (i32, i32) {
    %c0_i32 = arith.constant 0 : i32
    return %arg2, %arg1 : i32, i32
  }
  func.func @transform_2(%arg0: i32, %arg1: i32, %arg2: i32) -> (i32, i32) {
    %c0_i32 = arith.constant 0 : i32
    %c0_i32_0 = arith.constant 0 : i32
    return %c0_i32, %arg1 : i32, i32
  }
  func.func @transform_3(%arg0: i32, %arg1: i32, %arg2: i32) -> (i32, i32) {
    %c0_i32 = arith.constant 0 : i32
    return %arg0, %arg1 : i32, i32
  }
}

</mosaic_0001>

<bundles_post_ra>
// kernel: matmul_bias_act.1
= control target key start
LH: loop header
LB: loop body
LE: loop exit
PB: predicated region body
PF: predicated region fallthrough
CT: control target
= control target key end

     0   :  { %8 = vsyncpa [#allocation4], 0  ;;  %s5255_s0 = inlined_call_operand.vmem [shape: bf16[2048,147], index: 0, kind: input, shape index: {}]   ;;  %s5256_s1 = inlined_call_operand.vmem [shape: bf16[147,128], index: 1, kind: input, shape index: {}]   ;;  %s5257_s2 = inlined_call_operand.vmem [shape: f32[1,128], index: 2, kind: input, shape index: {}]   ;;  %s5258_s3 = inlined_call_operand.hbm [shape: bf16[2048,128], index: 3, kind: output, shape index: {}]  }
   0x1   :  { %10 = vsyncpa [#allocation4 + $0x1], 0  ;;  %s4708_s12 = smov 0   ;;  %s4710_s13 = smov 0  }
   0x2   :  { %s4712_s14 = smov 0   ;;  %s4714_s15 = smov 0  }
   0x3   :  { %s4716_s16 = smov 0   ;;  %s4718_s17 = smov 0  }
   0x4 LB: > { %s3461_s18 = sadd.s32 4294967295, %s4681_s17   ;;  %s3462_s19 = sadd.s32 4294967294, %s4681_s17   ;;  %s4681_s17 = sphi %s4718_s17, %s16_s17   ;;  %s4677_s16 = sphi %s4716_s16, %s5265_s16   ;;  %s4673_s15 = sphi %s4714_s15, %s5264_s15   ;;  %s4669_s14 = sphi %s4712_s14, %s5263_s14   ;;  %s4665_s13 = sphi %s4710_s13, %s5262_s13   ;;  %s4661_s12 = sphi %s4708_s12, %s5261_s12  }
   0x5   : > { %s35_s20 = sadd.s32 1, %s4677_s16  ;;  %s126_s21 = sadd.s32 1, %s4669_s14 }
   0x6   : > { %p37_p0 = scmp.ge.s32.totalorder %s35_s20, 2  ;;  %p136_p1 = scmp.ne.s32.totalorder %s4669_s14, %s4665_s13 }
   0x7   : > { %p137_p2 = scmp.eq.s32.totalorder %s3461_s18, 1  ;;  %p142_p3 = scmp.ne.s32.totalorder %s4665_s13, %s4661_s12 }
   0x8   : > { %s5267_s20 = smov (%p37_p0, %s35_s20), 0  ;;  %p143_p5 = scmp.eq.s32.totalorder %s3462_s19, 1 }
   0x9   : > { %p4748_p4 = por %p137_p2, %p136_p1  ;;  %s121_s23 = ssub.s32 %s4677_s16, %s5267_s20 }
   0xa   : > { %p3467_p6 = scmp.ge.s32.totalorder %s4681_s17, 1  ;;  %p124_p7 = scmp.eq.s32.totalorder %s121_s23, 0 }
   0xb   : > { %p4755_p8 = por %p143_p5, %p142_p3  ;;  %p194_p9 = scmp.lt.s32.totalorder %s4681_s17, 3 }
   0xc   : > { %s4761_s25 = scalar_select %p124_p7, %s4669_s14, %s126_s21  }
   0xd   : > { %p195_p10 = pnand %p3467_p6, %p194_p9 }
   0xe   : > { %v4400_v0 = vld [vmem:[%s5256_s1] sm:$0xff] (!%p195_p10)   ;;  %v4683_v1 = vmov (!%p195_p10), 0   ;;  %v4401_v2 = vld [vmem:[%s5256_s1 + $0x8] sm:$0xff] (!%p195_p10)   ;;  %v4402_v3 = vld [vmem:[%s5256_s1 + $0x10] sm:$0xff] (!%p195_p10)   ;;  %s3469_s5 = sshll.u32 (!%p195_p10), %s4673_s15, 7  ;;  %vm1300_vm0 = vcmask (!%p195_p10), 154624  }
   0xf   : > { %198 = sbr.rel (%p195_p10) target bundleno = 538 (0x21a), region = 32  ;;  %1500 = vmatprep.subr.bf16.mxu0 (!%p195_p10), %v4683_v1  ;;  %4321 = vmatprep.subr.bf16.mxu1 (!%p195_p10), %v4683_v1  ;;  %p236_p11 = scmp.lt.s32.totalorder (!%p195_p10), %s3469_s5, 255  ;;  %v4403_v4 = vld [vmem:[%s5256_s1 + $0x18] sm:$0xff] (!%p195_p10)   ;;  %v4404_v5 = vld [vmem:[%s5256_s1 + $0x20] sm:$0xff] (!%p195_p10)   ;;  %v4405_v8 = vld [vmem:[%s5256_s1 + $0x28] sm:$0xff] (!%p195_p10)   ;;  %vm1493_vm1 = vcmask (!%p195_p10), 1040384  }
  0x10   : > { %1501 = vmatpush1.bf16.msra.mxu0 (!%p195_p10), %v4400_v0  ;;  %4331 = vmatpush1.bf16.msra.mxu1 (!%p195_p10), %v4400_v0  ;;  %v4406_v9 = vld [vmem:[%s5256_s1 + $0x30] sm:$0xff] (!%p195_p10)   ;;  %v4407_v10 = vld [vmem:[%s5256_s1 + $0x38] sm:$0xff] (!%p195_p10)   ;;  %vm1494_vm2 = vcmask (!%p195_p10), 1041408   ;;  %v4684_v11 = vmov (!%p195_p10), 65535   ;;  %v4408_v13 = vld [vmem:[%s5256_s1 + $0x40] sm:$0xff] (!%p195_p10)   ;;  %s231_s9 = sand.u32 (!%p195_p10), 1, %s4665_s13  }
  0x11   : > { %1502 = vmatprep.subr.bf16.mxu0 (!%p195_p10), %v4683_v1  ;;  %4322 = vmatprep.subr.bf16.mxu1 (!%p195_p10), %v4683_v1  ;;  %v1495_v12 = vsel (!%p195_p10), %vm1493_vm1, 4294967295, %v4684_v11  ;;  %v4409_v14 = vld [vmem:[%s5256_s1 + $0x48] ss:$0 sps:$4 sm:$0x33] (!%p195_p10)   ;;  %s3468_s10 = sshll.u32 (!%p195_p10), %s231_s9, 9  ;;  %s3937_s21 = sshll.u32 (!%p195_p10), %s4673_s15, 13 }
  0x12   : > { %v1496_v15 = vsel (!%p195_p10), %vm1494_vm2, %v1495_v12, 0  ;;  %s4983_s18 = scalar_lea.vmem (!%p195_p10), [#allocation3], %s3468_s10  ;;  %s5201_s28 = scalar_lea.hbm (!%p195_p10), %s5258_s3, %s3937_s21 }
  0x13   : > { %v1498_v16 = vand.u32 (!%p195_p10), %v4409_v14, %v1496_v15  ;;  %s3350_s23 = sshll.u32 (!%p195_p10), %s4983_s18, 4  ;;  %s5209_s15 = scalar_lea.sflag (!%p195_p10), [#allocation4], %s231_s9  ;;  %s5203_s23 = int_to_ptr.vmem [resolvable:$true] %s3350_s23 }
  0x14   : > { %1503 = vmatpush1.bf16.msra.mxu0 (!%p195_p10), %v4401_v2  ;;  %4332 = vmatpush1.bf16.msra.mxu1 (!%p195_p10), %v4401_v2  ;;  %s4603_s29 = scalar_lea.vmem (!%p195_p10), %s5203_s23, 8192  ;;  %s4685_s30 = smov (!%p195_p10), [#allocation3]  }
  0x15   : > { %1504 = vmatprep.subr.bf16.mxu0 (!%p195_p10), %v4683_v1  ;;  %4323 = vmatprep.subr.bf16.mxu1 (!%p195_p10), %v4683_v1  ;;  %p4604_p12 = scmp.ne.s32.totalorder (!%p195_p10), %s5203_s23, %s4603_s29  ;;  %s4607_s4 = sshll.u32 (!%p195_p10), %s4685_s30, 4  ;;  %s4608_s4 = int_to_ptr.vmem [resolvable:$false] %s4607_s4 }
  0x16   : > { %s5269_s5 = smov (!%p236_p11, %s3469_s5), 255  ;;  %p4610_p1 = scmp.lt.s32.totalorder %s5203_s23, %s4608_s4 }
  0x17   : > { %s3808_s8 = sshll.u32 %s5269_s5, 3  ;;  %p4605_p13 = pnand %p4604_p12, %p4748_p4 }
  0x18   : > { %1505 = vmatpush1.bf16.msra.mxu0 %v4402_v3  ;;  %4333 = vmatpush1.bf16.msra.mxu1 %v4402_v3  ;;  %s4779_s11 = scalar_lea.vmem %s5255_s0, %s3808_s8  ;;  %s4609_s5 = scalar_lea.vmem %s4608_s4, 16384 }
  0x19   : > { %1506 = vmatprep.subr.bf16.mxu0 %v4683_v1  ;;  %4324 = vmatprep.subr.bf16.mxu1 %v4683_v1  ;;  %v4412_v6 = vld [vmem:[%s4779_s11 + $0x4] ss:$8 sps:$4 sm:$0xff]   ;;  %v4410_v17 = vld [vmem:[%s4779_s11] ss:$8 sps:$4 sm:$0xff]   ;;  %v4416_v19 = vld [vmem:[%s4779_s11 + $0x14] ss:$8 sps:$4 sm:$0xff]   ;;  %p4606_p0 = pneg %p4605_p13  ;;  %p4611_p2 = scmp.lt.s32.totalorder %s4609_s5, %s4603_s29 }
  0x1a   : > { %v4415_v7 = vld [vmem:[%s4779_s11 + $0x204] ss:$8 sps:$4 sm:$0xff]   ;;  %3610 = vmatprep.mubr.msk.bf16.mxu0 %vm1300_vm0, %v4412_v6  ;;  %v4413_v18 = vld [vmem:[%s4779_s11 + $0x200] ss:$8 sps:$4 sm:$0xff]   ;;  %v4418_v20 = vld [vmem:[%s4779_s11 + $0x214] ss:$8 sps:$4 sm:$0xff]  }
  0x1b   : > { %3642 = vmatprep.mubr.msk.bf16.mxu1 %vm1300_vm0, %v4415_v7  ;;  %v4420_v21 = vld [vmem:[%s4779_s11 + $0x10] ss:$8 sps:$4 sm:$0xff]   ;;  %v4422_v23 = vld [vmem:[%s4779_s11 + $0x24] ss:$8 sps:$4 sm:$0xff]   ;;  %v4426_v25 = vld [vmem:[%s4779_s11 + $0x20] ss:$8 sps:$4 sm:$0xff]   ;;  %p4612_p3 = por %p4611_p2, %p4610_p1 }
  0x1c   : > { %1507 = vmatpush1.bf16.msra.mxu0 %v4403_v4  ;;  %4334 = vmatpush1.bf16.msra.mxu1 %v4403_v4  ;;  %v4421_v22 = vld [vmem:[%s4779_s11 + $0x210] ss:$8 sps:$4 sm:$0xff]   ;;  %v4424_v24 = vld [vmem:[%s4779_s11 + $0x224] ss:$8 sps:$4 sm:$0xff]   ;;  %v4427_v26 = vld [vmem:[%s4779_s11 + $0x220] ss:$8 sps:$4 sm:$0xff]  }
  0x1d   : > { %1508 = vmatprep.subr.bf16.mxu0 %v4683_v1  ;;  %4325 = vmatprep.subr.bf16.mxu1 %v4683_v1  ;;  %v4428_v27 = vld [vmem:[%s4779_s11 + $0x34] ss:$8 sps:$4 sm:$0xff]   ;;  %v4432_v29 = vld [vmem:[%s4779_s11 + $0x30] ss:$8 sps:$4 sm:$0xff]   ;;  %v4434_v31 = vld [vmem:[%s4779_s11 + $0x44] ss:$8 sps:$4 sm:$0xff]   ;;  %p4613_p5 = pnand %p4612_p3, %p4606_p0 }
  0x1e   : > { %v4430_v28 = vld [vmem:[%s4779_s11 + $0x234] ss:$8 sps:$4 sm:$0xff]   ;;  %v4433_v30 = vld [vmem:[%s4779_s11 + $0x230] ss:$8 sps:$4 sm:$0xff]   ;;  %v4436_v32 = vld [vmem:[%s4779_s11 + $0x244] ss:$8 sps:$4 sm:$0xff]  }
  0x1f   : > { %v4438_v33 = vld [vmem:[%s4779_s11 + $0x40] ss:$8 sps:$4 sm:$0xff]   ;;  %v4440_v35 = vld [vmem:[%s4779_s11 + $0x54] ss:$8 sps:$4 sm:$0xff]   ;;  %v4444_v37 = vld [vmem:[%s4779_s11 + $0x50] ss:$8 sps:$4 sm:$0xff]  }
  0x20   : > { %1509 = vmatpush1.bf16.msra.mxu0 %v4404_v5  ;;  %4335 = vmatpush1.bf16.msra.mxu1 %v4404_v5  ;;  %v4439_v34 = vld [vmem:[%s4779_s11 + $0x240] ss:$8 sps:$4 sm:$0xff]   ;;  %v4442_v36 = vld [vmem:[%s4779_s11 + $0x254] ss:$8 sps:$4 sm:$0xff]   ;;  %v4445_v38 = vld [vmem:[%s4779_s11 + $0x250] ss:$8 sps:$4 sm:$0xff]  }
  0x21   : > { %1510 = vmatprep.subr.bf16.mxu0 %v4683_v1  ;;  %4326 = vmatprep.subr.bf16.mxu1 %v4683_v1  ;;  %v4446_v39 = vld [vmem:[%s4779_s11 + $0x64] ss:$8 sps:$4 sm:$0xff]   ;;  %v4450_v41 = vld [vmem:[%s4779_s11 + $0x60] ss:$8 sps:$4 sm:$0xff]   ;;  %v4452_v43 = vld [vmem:[%s4779_s11 + $0x74] ss:$8 sps:$4 sm:$0xff]  }
  0x22   : > { %v4448_v40 = vld [vmem:[%s4779_s11 + $0x264] ss:$8 sps:$4 sm:$0xff]   ;;  %v4451_v42 = vld [vmem:[%s4779_s11 + $0x260] ss:$8 sps:$4 sm:$0xff]   ;;  %v4454_v44 = vld [vmem:[%s4779_s11 + $0x274] ss:$8 sps:$4 sm:$0xff]  }
  0x23   : > { %v4456_v45 = vld [vmem:[%s4779_s11 + $0x70] ss:$8 sps:$4 sm:$0xff]   ;;  %v4458_v47 = vld [vmem:[%s4779_s11 + $0x84] ss:$8 sps:$4 sm:$0xff]   ;;  %v4462_v49 = vld [vmem:[%s4779_s11 + $0x80] ss:$8 sps:$4 sm:$0xff]  }
  0x24   : > { %1511 = vmatpush1.bf16.msra.mxu0 %v4405_v8  ;;  %4336 = vmatpush1.bf16.msra.mxu1 %v4405_v8  ;;  %v4457_v46 = vld [vmem:[%s4779_s11 + $0x270] ss:$8 sps:$4 sm:$0xff]   ;;  %v4460_v48 = vld [vmem:[%s4779_s11 + $0x284] ss:$8 sps:$4 sm:$0xff]   ;;  %v4463_v50 = vld [vmem:[%s4779_s11 + $0x280] ss:$8 sps:$4 sm:$0xff]  }
  0x25   : > { %1512 = vmatprep.subr.bf16.mxu0 %v4683_v1  ;;  %4327 = vmatprep.subr.bf16.mxu1 %v4683_v1  ;;  %v4464_v51 = vld [vmem:[%s4779_s11 + $0x94] ss:$8 sps:$4 sm:$0xff]   ;;  %v4468_v53 = vld [vmem:[%s4779_s11 + $0x90] ss:$8 sps:$4 sm:$0xff]   ;;  %v4470_v55 = vld [vmem:[%s4779_s11 + $0xa4] ss:$8 sps:$4 sm:$0xff]  }
  0x26   : > { %v4466_v52 = vld [vmem:[%s4779_s11 + $0x294] ss:$8 sps:$4 sm:$0xff]   ;;  %v4469_v54 = vld [vmem:[%s4779_s11 + $0x290] ss:$8 sps:$4 sm:$0xff]   ;;  %v4472_v56 = vld [vmem:[%s4779_s11 + $0x2a4] ss:$8 sps:$4 sm:$0xff]  }
  0x27   : > { %v4474_v57 = vld [vmem:[%s4779_s11 + $0xa0] ss:$8 sps:$4 sm:$0xff]   ;;  %v4476_v59 = vld [vmem:[%s4779_s11 + $0xb4] ss:$8 sps:$4 sm:$0xff]   ;;  %v4480_v61 = vld [vmem:[%s4779_s11 + $0xb0] ss:$8 sps:$4 sm:$0xff]  }
  0x28   : > { %1513 = vmatpush1.bf16.msra.mxu0 %v4406_v9  ;;  %4337 = vmatpush1.bf16.msra.mxu1 %v4406_v9  ;;  %v4475_v58 = vld [vmem:[%s4779_s11 + $0x2a0] ss:$8 sps:$4 sm:$0xff]   ;;  %v4478_v60 = vld [vmem:[%s4779_s11 + $0x2b4] ss:$8 sps:$4 sm:$0xff]   ;;  %v4481_v62 = vld [vmem:[%s4779_s11 + $0x2b0] ss:$8 sps:$4 sm:$0xff]  }
  0x29   : > { %1514 = vmatprep.subr.bf16.mxu0 %v4683_v1  ;;  %4328 = vmatprep.subr.bf16.mxu1 %v4683_v1  ;;  %v4482_v63 = vld [vmem:[%s4779_s11 + $0xc4] ss:$8 sps:$4 sm:$0xff]   ;;  %v4487_v2 = vld [vmem:[%s4779_s11 + $0x2c0] ss:$8 sps:$4 sm:$0xff]   ;;  %v4488_v3 = vld [vmem:[%s4779_s11 + $0xd4] ss:$8 sps:$4 sm:$0xff]  }
  0x2a   : > { %v4484_v0 = vld [vmem:[%s4779_s11 + $0x2c4] ss:$8 sps:$4 sm:$0xff]   ;;  %v4490_v4 = vld [vmem:[%s4779_s11 + $0x2d4] ss:$8 sps:$4 sm:$0xff]   ;;  %v4492_v5 = vld [vmem:[%s4779_s11 + $0xd0] ss:$8 sps:$4 sm:$0xff]  }
  0x2b   : > { %v4493_v6 = vld [vmem:[%s4779_s11 + $0x2d0] ss:$8 sps:$4 sm:$0xff]   ;;  %v4494_v7 = vld [vmem:[%s4779_s11 + $0xe4] ss:$8 sps:$4 sm:$0xff]   ;;  %v4498_v9 = vld [vmem:[%s4779_s11 + $0xe0] ss:$8 sps:$4 sm:$0xff]  }
  0x2c   : > { %1515 = vmatpush1.bf16.msra.mxu0 %v4407_v10  ;;  %4338 = vmatpush1.bf16.msra.mxu1 %v4407_v10  ;;  %v4496_v8 = vld [vmem:[%s4779_s11 + $0x2e4] ss:$8 sps:$4 sm:$0xff]   ;;  %v4499_v10 = vld [vmem:[%s4779_s11 + $0x2e0] ss:$8 sps:$4 sm:$0xff]   ;;  %v4500_v11 = vld [vmem:[%s4779_s11 + $0xf4] ss:$8 sps:$4 sm:$0xff]  }
  0x2d   : > { %1516 = vmatprep.subr.bf16.mxu0 %v4683_v1  ;;  %4329 = vmatprep.subr.bf16.mxu1 %v4683_v1  ;;  %v4502_v12 = vld [vmem:[%s4779_s11 + $0x2f4] ss:$8 sps:$4 sm:$0xff]   ;;  %v4505_v14 = vld [vmem:[%s4779_s11 + $0x2f0] ss:$8 sps:$4 sm:$0xff]   ;;  %v4506_v15 = vld [vmem:[%s4779_s11 + $0x104] ss:$8 sps:$4 sm:$0xff]  }
  0x30   : > { %1517 = vmatpush1.bf16.msra.mxu0 %v4408_v13  ;;  %4339 = vmatpush1.bf16.msra.mxu1 %v4408_v13  ;;  %v4504_v13 = vld [vmem:[%s4779_s11 + $0xf0] ss:$8 sps:$4 sm:$0xff]  }
  0x31   : > { %1518 = vmatprep.subr.bf16.mxu0 %v4683_v1  ;;  %4330 = vmatprep.subr.bf16.mxu1 %v4683_v1  ;;  %v4486_v1 = vld [vmem:[%s4779_s11 + $0xc0] ss:$8 sps:$4 sm:$0xff]  }
  0x34   : > { %1519 = vmatpush1.bf16.msra.mxu0 %v1498_v16  ;;  %4340 = vmatpush1.bf16.msra.mxu1 %v1498_v16  ;;  %v4508_v16 = vld [vmem:[%s4779_s11 + $0x304] ss:$8 sps:$4 sm:$0xff]  }
  0x37   : > { %1533 = vmatmul.mubr.bf16.vlgmr.msra.gmra.mrb[0].mxu0 %v4410_v17  ;;  %1789 = vmatmul.mubr.bf16.vlgmr.msra.gmra.mrb[0].mxu1 %v4413_v18  ;;  %v4510_v17 = vld [vmem:[%s4779_s11 + $0x100] ss:$8 sps:$4 sm:$0xff]  }
  0x38   : > { %3611 = vmatprep.mubr.msk.bf16.mxu0 %vm1300_vm0, %v4416_v19  ;;  %3643 = vmatprep.mubr.msk.bf16.mxu1 %vm1300_vm0, %v4418_v20  ;;  %v4511_v18 = vld [vmem:[%s4779_s11 + $0x300] ss:$8 sps:$4 sm:$0xff]   ;;  %v4512_v19 = vld [vmem:[%s4779_s11 + $0x114] ss:$8 sps:$4 sm:$0xff]  }
  0x39   : > { %v4514_v20 = vld [vmem:[%s4779_s11 + $0x314] ss:$8 sps:$4 sm:$0xff]  }
  0x3f   : > { %1541 = vmatmul.mubr.bf16.gmra.mrb[4].mxu0 %v4420_v21  ;;  %1797 = vmatmul.mubr.bf16.gmra.mrb[4].mxu1 %v4421_v22  ;;  %v4516_v21 = vld [vmem:[%s4779_s11 + $0x110] ss:$8 sps:$4 sm:$0xff]  }
  0x40   : > { %3612 = vmatprep.mubr.msk.bf16.mxu0 %vm1300_vm0, %v4422_v23  ;;  %3644 = vmatprep.mubr.msk.bf16.mxu1 %vm1300_vm0, %v4424_v24  ;;  %v4517_v22 = vld [vmem:[%s4779_s11 + $0x310] ss:$8 sps:$4 sm:$0xff]   ;;  %v4518_v23 = vld [vmem:[%s4779_s11 + $0x124] ss:$8 sps:$4 sm:$0xff]  }
  0x41   : > { %v4520_v24 = vld [vmem:[%s4779_s11 + $0x324] ss:$8 sps:$4 sm:$0xff]  }
  0x47   : > { %1549 = vmatmul.mubr.bf16.gmra.mrb[8].mxu0 %v4426_v25  ;;  %1805 = vmatmul.mubr.bf16.gmra.mrb[8].mxu1 %v4427_v26  ;;  %v4522_v25 = vld [vmem:[%s4779_s11 + $0x120] ss:$8 sps:$4 sm:$0xff]  }
  0x48   : > { %3613 = vmatprep.mubr.msk.bf16.mxu0 %vm1300_vm0, %v4428_v27  ;;  %3645 = vmatprep.mubr.msk.bf16.mxu1 %vm1300_vm0, %v4430_v28  ;;  %v4523_v26 = vld [vmem:[%s4779_s11 + $0x320] ss:$8 sps:$4 sm:$0xff]   ;;  %v4524_v27 = vld [vmem:[%s4779_s11 + $0x134] ss:$8 sps:$4 sm:$0xff]  }
  0x49   : > { %v4526_v28 = vld [vmem:[%s4779_s11 + $0x334] ss:$8 sps:$4 sm:$0xff]  }
  0x4f   : > { %1557 = vmatmul.mubr.bf16.gmra.mrb[12].mxu0 %v4432_v29  ;;  %1813 = vmatmul.mubr.bf16.gmra.mrb[12].mxu1 %v4433_v30  ;;  %v4528_v29 = vld [vmem:[%s4779_s11 + $0x130] ss:$8 sps:$4 sm:$0xff]  }
  0x50   : > { %3614 = vmatprep.mubr.msk.bf16.mxu0 %vm1300_vm0, %v4434_v31  ;;  %3646 = vmatprep.mubr.msk.bf16.mxu1 %vm1300_vm0, %v4436_v32  ;;  %v4529_v30 = vld [vmem:[%s4779_s11 + $0x330] ss:$8 sps:$4 sm:$0xff]   ;;  %v4530_v31 = vld [vmem:[%s4779_s11 + $0x144] ss:$8 sps:$4 sm:$0xff]  }
  0x51   : > { %v4532_v32 = vld [vmem:[%s4779_s11 + $0x344] ss:$8 sps:$4 sm:$0xff]  }
  0x57   : > { %1565 = vmatmul.mubr.bf16.gmra.mrb[16].mxu0 %v4438_v33  ;;  %1821 = vmatmul.mubr.bf16.gmra.mrb[16].mxu1 %v4439_v34  ;;  %v4534_v33 = vld [vmem:[%s4779_s11 + $0x140] ss:$8 sps:$4 sm:$0xff]  }
  0x58   : > { %3615 = vmatprep.mubr.msk.bf16.mxu0 %vm1300_vm0, %v4440_v35  ;;  %3647 = vmatprep.mubr.msk.bf16.mxu1 %vm1300_vm0, %v4442_v36  ;;  %v4535_v34 = vld [vmem:[%s4779_s11 + $0x340] ss:$8 sps:$4 sm:$0xff]   ;;  %v4536_v35 = vld [vmem:[%s4779_s11 + $0x154] ss:$8 sps:$4 sm:$0xff]  }
  0x59   : > { %v4538_v36 = vld [vmem:[%s4779_s11 + $0x354] ss:$8 sps:$4 sm:$0xff]  }
  0x5f   : > { %1573 = vmatmul.mubr.bf16.gmra.mrb[20].mxu0 %v4444_v37  ;;  %1829 = vmatmul.mubr.bf16.gmra.mrb[20].mxu1 %v4445_v38  ;;  %v4540_v37 = vld [vmem:[%s4779_s11 + $0x150] ss:$8 sps:$4 sm:$0xff]  }
  0x60   : > { %3616 = vmatprep.mubr.msk.bf16.mxu0 %vm1300_vm0, %v4446_v39  ;;  %3648 = vmatprep.mubr.msk.bf16.mxu1 %vm1300_vm0, %v4448_v40  ;;  %v4541_v38 = vld [vmem:[%s4779_s11 + $0x350] ss:$8 sps:$4 sm:$0xff]   ;;  %v4542_v39 = vld [vmem:[%s4779_s11 + $0x164] ss:$8 sps:$4 sm:$0xff]  }
  0x61   : > { %v4544_v40 = vld [vmem:[%s4779_s11 + $0x364] ss:$8 sps:$4 sm:$0xff]  }
  0x67   : > { %1581 = vmatmul.mubr.bf16.gmra.mrb[24].mxu0 %v4450_v41  ;;  %1837 = vmatmul.mubr.bf16.gmra.mrb[24].mxu1 %v4451_v42  ;;  %v4546_v41 = vld [vmem:[%s4779_s11 + $0x160] ss:$8 sps:$4 sm:$0xff]  }
  0x68   : > { %3617 = vmatprep.mubr.msk.bf16.mxu0 %vm1300_vm0, %v4452_v43  ;;  %3649 = vmatprep.mubr.msk.bf16.mxu1 %vm1300_vm0, %v4454_v44  ;;  %v4547_v42 = vld [vmem:[%s4779_s11 + $0x360] ss:$8 sps:$4 sm:$0xff]   ;;  %v4548_v43 = vld [vmem:[%s4779_s11 + $0x174] ss:$8 sps:$4 sm:$0xff]  }
  0x69   : > { %v4550_v44 = vld [vmem:[%s4779_s11 + $0x374] ss:$8 sps:$4 sm:$0xff]  }
  0x6f   : > { %1589 = vmatmul.mubr.bf16.gmra.mrb[28].mxu0 %v4456_v45  ;;  %1845 = vmatmul.mubr.bf16.gmra.mrb[28].mxu1 %v4457_v46  ;;  %v4552_v45 = vld [vmem:[%s4779_s11 + $0x170] ss:$8 sps:$4 sm:$0xff]  }
  0x70   : > { %3618 = vmatprep.mubr.msk.bf16.mxu0 %vm1300_vm0, %v4458_v47  ;;  %3650 = vmatprep.mubr.msk.bf16.mxu1 %vm1300_vm0, %v4460_v48  ;;  %v4553_v46 = vld [vmem:[%s4779_s11 + $0x370] ss:$8 sps:$4 sm:$0xff]   ;;  %v4554_v47 = vld [vmem:[%s4779_s11 + $0x184] ss:$8 sps:$4 sm:$0xff]  }
  0x71   : > { %v4556_v48 = vld [vmem:[%s4779_s11 + $0x384] ss:$8 sps:$4 sm:$0xff]  }
  0x77   : > { %1597 = vmatmul.mubr.bf16.gmra.mrb[32].mxu0 %v4462_v49  ;;  %1853 = vmatmul.mubr.bf16.gmra.mrb[32].mxu1 %v4463_v50  ;;  %v4558_v49 = vld [vmem:[%s4779_s11 + $0x180] ss:$8 sps:$4 sm:$0xff]  }
  0x78   : > { %3619 = vmatprep.mubr.msk.bf16.mxu0 %vm1300_vm0, %v4464_v51  ;;  %3651 = vmatprep.mubr.msk.bf16.mxu1 %vm1300_vm0, %v4466_v52  ;;  %v4559_v50 = vld [vmem:[%s4779_s11 + $0x380] ss:$8 sps:$4 sm:$0xff]   ;;  %v4560_v51 = vld [vmem:[%s4779_s11 + $0x194] ss:$8 sps:$4 sm:$0xff]  }
  0x79   : > { %v4562_v52 = vld [vmem:[%s4779_s11 + $0x394] ss:$8 sps:$4 sm:$0xff]  }
  0x7f   : > { %1605 = vmatmul.mubr.bf16.gmra.mrb[36].mxu0 %v4468_v53  ;;  %1861 = vmatmul.mubr.bf16.gmra.mrb[36].mxu1 %v4469_v54  ;;  %v4564_v53 = vld [vmem:[%s4779_s11 + $0x190] ss:$8 sps:$4 sm:$0xff]  }
  0x80   : > { %3620 = vmatprep.mubr.msk.bf16.mxu0 %vm1300_vm0, %v4470_v55  ;;  %3652 = vmatprep.mubr.msk.bf16.mxu1 %vm1300_vm0, %v4472_v56  ;;  %v4565_v54 = vld [vmem:[%s4779_s11 + $0x390] ss:$8 sps:$4 sm:$0xff]   ;;  %v4566_v55 = vld [vmem:[%s4779_s11 + $0x1a4] ss:$8 sps:$4 sm:$0xff]  }
  0x81   : > { %v4568_v56 = vld [vmem:[%s4779_s11 + $0x3a4] ss:$8 sps:$4 sm:$0xff]  }
  0x87   : > { %1613 = vmatmul.mubr.bf16.gmra.mrb[40].mxu0 %v4474_v57  ;;  %1869 = vmatmul.mubr.bf16.gmra.mrb[40].mxu1 %v4475_v58  ;;  %v4570_v57 = vld [vmem:[%s4779_s11 + $0x1a0] ss:$8 sps:$4 sm:$0xff]  }
  0x88   : > { %3621 = vmatprep.mubr.msk.bf16.mxu0 %vm1300_vm0, %v4476_v59  ;;  %3653 = vmatprep.mubr.msk.bf16.mxu1 %vm1300_vm0, %v4478_v60  ;;  %v4571_v58 = vld [vmem:[%s4779_s11 + $0x3a0] ss:$8 sps:$4 sm:$0xff]   ;;  %v4572_v59 = vld [vmem:[%s4779_s11 + $0x1b4] ss:$8 sps:$4 sm:$0xff]  }
  0x89   : > { %v4574_v60 = vld [vmem:[%s4779_s11 + $0x3b4] ss:$8 sps:$4 sm:$0xff]  }
  0x8f   : > { %1621 = vmatmul.mubr.bf16.gmra.mrb[44].mxu0 %v4480_v61  ;;  %1877 = vmatmul.mubr.bf16.gmra.mrb[44].mxu1 %v4481_v62  ;;  %v4966_v61 = vld [vmem:[%s5257_s2] ss:$0 sm:$0xff] }
  0x90   : > { %3622 = vmatprep.mubr.msk.bf16.mxu0 %vm1300_vm0, %v4482_v63  ;;  %3654 = vmatprep.mubr.msk.bf16.mxu1 %vm1300_vm0, %v4484_v0 }
  0x97   : > { %1629 = vmatmul.mubr.bf16.gmra.mrb[48].mxu0 %v4486_v1  ;;  %1885 = vmatmul.mubr.bf16.gmra.mrb[48].mxu1 %v4487_v2 }
  0x98   : > { %3623 = vmatprep.mubr.msk.bf16.mxu0 %vm1300_vm0, %v4488_v3  ;;  %3655 = vmatprep.mubr.msk.bf16.mxu1 %vm1300_vm0, %v4490_v4  ;;  %v4576_v4 = vld [vmem:[%s4779_s11 + $0x1b0] ss:$8 sps:$4 sm:$0xff]  }
  0x9f   : > { %1637 = vmatmul.mubr.bf16.gmra.mrb[52].mxu0 %v4492_v5  ;;  %1893 = vmatmul.mubr.bf16.gmra.mrb[52].mxu1 %v4493_v6  ;;  %v4577_v5 = vld [vmem:[%s4779_s11 + $0x3b0] ss:$8 sps:$4 sm:$0xff]  }
  0xa0   : > { %3624 = vmatprep.mubr.msk.bf16.mxu0 %vm1300_vm0, %v4494_v7  ;;  %3656 = vmatprep.mubr.msk.bf16.mxu1 %vm1300_vm0, %v4496_v8  ;;  %v4578_v8 = vld [vmem:[%s4779_s11 + $0x1c4] ss:$8 sps:$4 sm:$0xff]  }
  0xa7   : > { %1645 = vmatmul.mubr.bf16.gmra.mrb[56].mxu0 %v4498_v9  ;;  %1901 = vmatmul.mubr.bf16.gmra.mrb[56].mxu1 %v4499_v10  ;;  %v4580_v9 = vld [vmem:[%s4779_s11 + $0x3c4] ss:$8 sps:$4 sm:$0xff]  }
  0xa8   : > { %3625 = vmatprep.mubr.msk.bf16.mxu0 %vm1300_vm0, %v4500_v11  ;;  %3657 = vmatprep.mubr.msk.bf16.mxu1 %vm1300_vm0, %v4502_v12 }
  0xaf   : > { %1653 = vmatmul.mubr.bf16.gmra.mrb[60].mxu0 %v4504_v13  ;;  %1909 = vmatmul.mubr.bf16.gmra.mrb[60].mxu1 %v4505_v14 }
  0xb0   : > { %3626 = vmatprep.mubr.msk.bf16.mxu0 %vm1300_vm0, %v4506_v15  ;;  %3658 = vmatprep.mubr.msk.bf16.mxu1 %vm1300_vm0, %v4508_v16 }
  0xb7   : > { %1661 = vmatmul.mubr.bf16.gmra.mrb[64].mxu0 %v4510_v17  ;;  %1917 = vmatmul.mubr.bf16.gmra.mrb[64].mxu1 %v4511_v18 }
  0xb8   : > { %3627 = vmatprep.mubr.msk.bf16.mxu0 %vm1300_vm0, %v4512_v19  ;;  %3659 = vmatprep.mubr.msk.bf16.mxu1 %vm1300_vm0, %v4514_v20 }
  0xbf   : > { %1669 = vmatmul.mubr.bf16.gmra.mrb[68].mxu0 %v4516_v21  ;;  %1925 = vmatmul.mubr.bf16.gmra.mrb[68].mxu1 %v4517_v22 }
  0xc0   : > { %3628 = vmatprep.mubr.msk.bf16.mxu0 %vm1300_vm0, %v4518_v23  ;;  %3660 = vmatprep.mubr.msk.bf16.mxu1 %vm1300_vm0, %v4520_v24 }
  0xc7   : > { %1677 = vmatmul.mubr.bf16.gmra.mrb[72].mxu0 %v4522_v25  ;;  %1933 = vmatmul.mubr.bf16.gmra.mrb[72].mxu1 %v4523_v26  ;;  %v4582_v26 = vld [vmem:[%s4779_s11 + $0x1c0] ss:$8 sps:$4 sm:$0xff]  }
  0xc8   : > { %3629 = vmatprep.mubr.msk.bf16.mxu0 %vm1300_vm0, %v4524_v27  ;;  %3661 = vmatprep.mubr.msk.bf16.mxu1 %vm1300_vm0, %v4526_v28  ;;  %v4583_v27 = vld [vmem:[%s4779_s11 + $0x3c0] ss:$8 sps:$4 sm:$0xff]  }
  0xcf   : > { %1685 = vmatmul.mubr.bf16.gmra.mrb[76].mxu0 %v4528_v29  ;;  %1941 = vmatmul.mubr.bf16.gmra.mrb[76].mxu1 %v4529_v30  ;;  %v4584_v30 = vld [vmem:[%s4779_s11 + $0x1d4] ss:$8 sps:$4 sm:$0xff]  }
  0xd0   : > { %3630 = vmatprep.mubr.msk.bf16.mxu0 %vm1300_vm0, %v4530_v31  ;;  %3662 = vmatprep.mubr.msk.bf16.mxu1 %vm1300_vm0, %v4532_v32  ;;  %v4586_v31 = vld [vmem:[%s4779_s11 + $0x3d4] ss:$8 sps:$4 sm:$0xff]  }
  0xd7   : > { %1693 = vmatmul.mubr.bf16.gmra.mrb[80].mxu0 %v4534_v33  ;;  %1949 = vmatmul.mubr.bf16.gmra.mrb[80].mxu1 %v4535_v34 }
  0xd8   : > { %3631 = vmatprep.mubr.msk.bf16.mxu0 %vm1300_vm0, %v4536_v35  ;;  %3663 = vmatprep.mubr.msk.bf16.mxu1 %vm1300_vm0, %v4538_v36 }
  0xdf   : > { %1701 = vmatmul.mubr.bf16.gmra.mrb[84].mxu0 %v4540_v37  ;;  %1957 = vmatmul.mubr.bf16.gmra.mrb[84].mxu1 %v4541_v38 }
  0xe0   : > { %3632 = vmatprep.mubr.msk.bf16.mxu0 %vm1300_vm0, %v4542_v39  ;;  %3664 = vmatprep.mubr.msk.bf16.mxu1 %vm1300_vm0, %v4544_v40 }
  0xe7   : > { %1709 = vmatmul.mubr.bf16.gmra.mrb[88].mxu0 %v4546_v41  ;;  %1965 = vmatmul.mubr.bf16.gmra.mrb[88].mxu1 %v4547_v42 }
  0xe8   : > { %3633 = vmatprep.mubr.msk.bf16.mxu0 %vm1300_vm0, %v4548_v43  ;;  %3665 = vmatprep.mubr.msk.bf16.mxu1 %vm1300_vm0, %v4550_v44 }
  0xef   : > { %1717 = vmatmul.mubr.bf16.gmra.mrb[92].mxu0 %v4552_v45  ;;  %1973 = vmatmul.mubr.bf16.gmra.mrb[92].mxu1 %v4553_v46 }
  0xf0   : > { %3634 = vmatprep.mubr.msk.bf16.mxu0 %vm1300_vm0, %v4554_v47  ;;  %3666 = vmatprep.mubr.msk.bf16.mxu1 %vm1300_vm0, %v4556_v48  ;;  %v4588_v48 = vld [vmem:[%s4779_s11 + $0x1d0] ss:$8 sps:$4 sm:$0xff]  }
  0xf7   : > { %1725 = vmatmul.mubr.bf16.gmra.mrb[96].mxu0 %v4558_v49  ;;  %1981 = vmatmul.mubr.bf16.gmra.mrb[96].mxu1 %v4559_v50  ;;  %v4589_v49 = vld [vmem:[%s4779_s11 + $0x3d0] ss:$8 sps:$4 sm:$0xff]  }
  0xf8   : > { %3635 = vmatprep.mubr.msk.bf16.mxu0 %vm1300_vm0, %v4560_v51  ;;  %3667 = vmatprep.mubr.msk.bf16.mxu1 %vm1300_vm0, %v4562_v52  ;;  %v4590_v52 = vld [vmem:[%s4779_s11 + $0x1e4] ss:$8 sps:$4 sm:$0xff]  }
  0xff   : > { %1733 = vmatmul.mubr.bf16.gmra.mrb[100].mxu0 %v4564_v53  ;;  %1989 = vmatmul.mubr.bf16.gmra.mrb[100].mxu1 %v4565_v54  ;;  %v4592_v53 = vld [vmem:[%s4779_s11 + $0x3e4] ss:$8 sps:$4 sm:$0xff]  }
 0x100   : > { %3636 = vmatprep.mubr.msk.bf16.mxu0 %vm1300_vm0, %v4566_v55  ;;  %3668 = vmatprep.mubr.msk.bf16.mxu1 %vm1300_vm0, %v4568_v56 }
 0x107   : > { %1741 = vmatmul.mubr.bf16.gmra.mrb[104].mxu0 %v4570_v57  ;;  %1997 = vmatmul.mubr.bf16.gmra.mrb[104].mxu1 %v4571_v58 }
 0x108   : > { %3637 = vmatprep.mubr.msk.bf16.mxu0 %vm1300_vm0, %v4572_v59  ;;  %3669 = vmatprep.mubr.msk.bf16.mxu1 %vm1300_vm0, %v4574_v60 }
 0x10a   : > { %v1534_v62 = vpop.f32.mrb[0].mxu0  ;;  %v1790_v63 = vpop.f32.mrb[0].mxu1 }
 0x10b   : > { %v2439_v0 = vadd.f32 %v4966_v61, %v1534_v62  ;;  %v2503_v1 = vadd.f32 %v4966_v61, %v1790_v63  ;;  %v1536_v2 = vpop.f32.mrb[1].mxu0  ;;  %v1792_v3 = vpop.f32.mrb[1].mxu1 }
 0x10c   : > { %v1537_v6 = vpop.f32.mrb[2].mxu0  ;;  %v1793_v7 = vpop.f32.mrb[2].mxu1 }
 0x10d   : > { %v2440_v10 = vadd.f32 %v4966_v61, %v1537_v6  ;;  %v2504_v11 = vadd.f32 %v4966_v61, %v1793_v7  ;;  %v1539_v12 = vpop.f32.mrb[3].mxu0  ;;  %v1795_v13 = vpop.f32.mrb[3].mxu1  ;;  %v2567_v14 = vmax.f32 %v2439_v0, 0.0  ;;  %v2631_v15 = vmax.f32 %v2503_v1, 0.0  ;;  %v4594_v7 = vld [vmem:[%s4779_s11 + $0x1e0] ss:$8 sps:$4 sm:$0xff]  }
 0x10e   : > { %v4598_v12 = vld [vmem:[%s4779_s11 + $0x3f4] ss:$8 sps:$4 sm:$0xff]  }
 0x10f   : > { %v2568_v16 = vmax.f32 %v2440_v10, 0.0  ;;  %v2632_v17 = vmax.f32 %v2504_v11, 0.0  ;;  %1749 = vmatmul.mubr.bf16.gmra.mrb[108].mxu0 %v4576_v4  ;;  %2005 = vmatmul.mubr.bf16.gmra.mrb[108].mxu1 %v4577_v5  ;;  %v4596_v11 = vld [vmem:[%s4779_s11 + $0x1f4] ss:$8 sps:$4 sm:$0xff]  }
 0x110   : > { %3638 = vmatprep.mubr.msk.bf16.mxu0 %vm1300_vm0, %v4578_v8  ;;  %3670 = vmatprep.mubr.msk.bf16.mxu1 %vm1300_vm0, %v4580_v9  ;;  %v4595_v8 = vld [vmem:[%s4779_s11 + $0x3e0] ss:$8 sps:$4 sm:$0xff]  }
 0x111   : > { %v3941_v18 = vpack.c.bf16 %v2568_v16, %v2567_v14  ;;  %v4101_v19 = vpack.c.bf16 %v2632_v17, %v2631_v15 }
 0x112   : > { %v1542_v20 = vpop.f32.mrb[4].mxu0  ;;  %v1798_v21 = vpop.f32.mrb[4].mxu1 }
 0x113   : > { %3942 = vst [vmem:[%s4983_s18] sm:$0xff] %v3941_v18   ;;  %4289 = vst [vmem:[%s4983_s18 + $0x100] sm:$0xff] %v4101_v19   ;;  %v2441_v22 = vadd.f32 %v4966_v61, %v1542_v20  ;;  %v2505_v23 = vadd.f32 %v4966_v61, %v1798_v21  ;;  %v1544_v24 = vpop.f32.mrb[5].mxu0  ;;  %v1800_v25 = vpop.f32.mrb[5].mxu1 }
 0x114   : > { %v1545_v28 = vpop.f32.mrb[6].mxu0  ;;  %v1801_v29 = vpop.f32.mrb[6].mxu1 }
 0x115   : > { %v2442_v32 = vadd.f32 %v4966_v61, %v1545_v28  ;;  %v2506_v33 = vadd.f32 %v4966_v61, %v1801_v29  ;;  %v1547_v34 = vpop.f32.mrb[7].mxu0  ;;  %v1803_v35 = vpop.f32.mrb[7].mxu1  ;;  %v2569_v36 = vmax.f32 %v2441_v22, 0.0  ;;  %v2633_v37 = vmax.f32 %v2505_v23, 0.0  ;;  %v4600_v29 = vld [vmem:[%s4779_s11 + $0x1f0] ss:$8 sps:$4 sm:$0xff]  }
 0x117   : > { %v2570_v38 = vmax.f32 %v2442_v32, 0.0  ;;  %v2634_v39 = vmax.f32 %v2506_v33, 0.0  ;;  %1757 = vmatmul.mubr.bf16.gmra.mrb[112].mxu0 %v4582_v26  ;;  %2013 = vmatmul.mubr.bf16.gmra.mrb[112].mxu1 %v4583_v27 }
 0x118   : > { %3639 = vmatprep.mubr.msk.bf16.mxu0 %vm1300_vm0, %v4584_v30  ;;  %3671 = vmatprep.mubr.msk.bf16.mxu1 %vm1300_vm0, %v4586_v31  ;;  %v4601_v30 = vld [vmem:[%s4779_s11 + $0x3f0] ss:$8 sps:$4 sm:$0xff]  }
 0x119   : > { %v3946_v40 = vpack.c.bf16 %v2570_v38, %v2569_v36  ;;  %v4106_v41 = vpack.c.bf16 %v2634_v39, %v2633_v37 }
 0x11a   : > { %v1550_v42 = vpop.f32.mrb[8].mxu0  ;;  %v1806_v43 = vpop.f32.mrb[8].mxu1 }
 0x11b   : > { %4258 = vst [vmem:[%s4983_s18 + $0x8] sm:$0xff] %v3946_v40   ;;  %4290 = vst [vmem:[%s4983_s18 + $0x108] sm:$0xff] %v4106_v41   ;;  %v2443_v44 = vadd.f32 %v4966_v61, %v1550_v42  ;;  %v2507_v45 = vadd.f32 %v4966_v61, %v1806_v43  ;;  %v1552_v46 = vpop.f32.mrb[9].mxu0  ;;  %v1808_v47 = vpop.f32.mrb[9].mxu1 }
 0x11c   : > { %v1553_v50 = vpop.f32.mrb[10].mxu0  ;;  %v1809_v51 = vpop.f32.mrb[10].mxu1 }
 0x11d   : > { %v2444_v54 = vadd.f32 %v4966_v61, %v1553_v50  ;;  %v2508_v55 = vadd.f32 %v4966_v61, %v1809_v51  ;;  %v1555_v56 = vpop.f32.mrb[11].mxu0  ;;  %v1811_v57 = vpop.f32.mrb[11].mxu1  ;;  %v2571_v58 = vmax.f32 %v2443_v44, 0.0  ;;  %v2635_v59 = vmax.f32 %v2507_v45, 0.0 }
 0x11f   : > { %v2572_v60 = vmax.f32 %v2444_v54, 0.0  ;;  %v2636_v62 = vmax.f32 %v2508_v55, 0.0  ;;  %1765 = vmatmul.mubr.bf16.gmra.mrb[116].mxu0 %v4588_v48  ;;  %2021 = vmatmul.mubr.bf16.gmra.mrb[116].mxu1 %v4589_v49 }
 0x120   : > { %3640 = vmatprep.mubr.msk.bf16.mxu0 %vm1300_vm0, %v4590_v52  ;;  %3672 = vmatprep.mubr.msk.bf16.mxu1 %vm1300_vm0, %v4592_v53 }
 0x121   : > { %v3951_v63 = vpack.c.bf16 %v2572_v60, %v2571_v58  ;;  %v4111_v0 = vpack.c.bf16 %v2636_v62, %v2635_v59 }
 0x122   : > { %v1558_v1 = vpop.f32.mrb[12].mxu0  ;;  %v1814_v2 = vpop.f32.mrb[12].mxu1 }
 0x123   : > { %4259 = vst [vmem:[%s4983_s18 + $0x10] sm:$0xff] %v3951_v63   ;;  %4291 = vst [vmem:[%s4983_s18 + $0x110] sm:$0xff] %v4111_v0   ;;  %v2445_v3 = vadd.f32 %v4966_v61, %v1558_v1  ;;  %v2509_v4 = vadd.f32 %v4966_v61, %v1814_v2  ;;  %v1560_v5 = vpop.f32.mrb[13].mxu0  ;;  %v1816_v6 = vpop.f32.mrb[13].mxu1 }
 0x124   : > { %v1561_v9 = vpop.f32.mrb[14].mxu0  ;;  %v1817_v10 = vpop.f32.mrb[14].mxu1 }
 0x125   : > { %v2446_v13 = vadd.f32 %v4966_v61, %v1561_v9  ;;  %v2510_v14 = vadd.f32 %v4966_v61, %v1817_v10  ;;  %v1563_v15 = vpop.f32.mrb[15].mxu0  ;;  %v1819_v16 = vpop.f32.mrb[15].mxu1  ;;  %v2573_v17 = vmax.f32 %v2445_v3, 0.0  ;;  %v2637_v18 = vmax.f32 %v2509_v4, 0.0 }
 0x127   : > { %v2574_v19 = vmax.f32 %v2446_v13, 0.0  ;;  %v2638_v20 = vmax.f32 %v2510_v14, 0.0  ;;  %1773 = vmatmul.mubr.bf16.gmra.mrb[120].mxu0 %v4594_v7  ;;  %2029 = vmatmul.mubr.bf16.gmra.mrb[120].mxu1 %v4595_v8 }
 0x128   : > { %3641 = vmatprep.mubr.msk.bf16.mxu0 %vm1300_vm0, %v4596_v11  ;;  %3673 = vmatprep.mubr.msk.bf16.mxu1 %vm1300_vm0, %v4598_v12 }
 0x129   : > { %v3956_v21 = vpack.c.bf16 %v2574_v19, %v2573_v17  ;;  %v4116_v22 = vpack.c.bf16 %v2638_v20, %v2637_v18 }
 0x12a   : > { %v1566_v23 = vpop.f32.mrb[16].mxu0  ;;  %v1822_v24 = vpop.f32.mrb[16].mxu1 }
 0x12b   : > { %4260 = vst [vmem:[%s4983_s18 + $0x18] sm:$0xff] %v3956_v21   ;;  %4292 = vst [vmem:[%s4983_s18 + $0x118] sm:$0xff] %v4116_v22   ;;  %v2447_v25 = vadd.f32 %v4966_v61, %v1566_v23  ;;  %v2511_v26 = vadd.f32 %v4966_v61, %v1822_v24  ;;  %v1568_v27 = vpop.f32.mrb[17].mxu0  ;;  %v1824_v28 = vpop.f32.mrb[17].mxu1 }
 0x12c   : > { %v1569_v31 = vpop.f32.mrb[18].mxu0  ;;  %v1825_v32 = vpop.f32.mrb[18].mxu1 }
 0x12d   : > { %v2448_v33 = vadd.f32 %v4966_v61, %v1569_v31  ;;  %v2512_v34 = vadd.f32 %v4966_v61, %v1825_v32  ;;  %v1571_v35 = vpop.f32.mrb[19].mxu0  ;;  %v1827_v36 = vpop.f32.mrb[19].mxu1  ;;  %v2575_v37 = vmax.f32 %v2447_v25, 0.0  ;;  %v2639_v38 = vmax.f32 %v2511_v26, 0.0 }
 0x12f   : > { %v2576_v39 = vmax.f32 %v2448_v33, 0.0  ;;  %v2640_v40 = vmax.f32 %v2512_v34, 0.0  ;;  %1781 = vmatmul.mubr.bf16.gmra.mrb[124].mxu0 %v4600_v29  ;;  %2037 = vmatmul.mubr.bf16.gmra.mrb[124].mxu1 %v4601_v30 }
 0x131   : > { %v3961_v41 = vpack.c.bf16 %v2576_v39, %v2575_v37  ;;  %v4121_v42 = vpack.c.bf16 %v2640_v40, %v2639_v38 }
 0x132   : > { %v1574_v43 = vpop.f32.mrb[20].mxu0  ;;  %v1830_v44 = vpop.f32.mrb[20].mxu1 }
 0x133   : > { %4261 = vst [vmem:[%s4983_s18 + $0x20] sm:$0xff] %v3961_v41   ;;  %4293 = vst [vmem:[%s4983_s18 + $0x120] sm:$0xff] %v4121_v42   ;;  %v2449_v45 = vadd.f32 %v4966_v61, %v1574_v43  ;;  %v2513_v46 = vadd.f32 %v4966_v61, %v1830_v44  ;;  %v1576_v47 = vpop.f32.mrb[21].mxu0  ;;  %v1832_v48 = vpop.f32.mrb[21].mxu1 }
 0x134   : > { %v1577_v49 = vpop.f32.mrb[22].mxu0  ;;  %v1833_v50 = vpop.f32.mrb[22].mxu1 }
 0x135   : > { %v2450_v51 = vadd.f32 %v4966_v61, %v1577_v49  ;;  %v2514_v52 = vadd.f32 %v4966_v61, %v1833_v50  ;;  %v1579_v53 = vpop.f32.mrb[23].mxu0  ;;  %v1835_v54 = vpop.f32.mrb[23].mxu1  ;;  %v2577_v55 = vmax.f32 %v2449_v45, 0.0  ;;  %v2641_v56 = vmax.f32 %v2513_v46, 0.0 }
 0x137   : > { %v2578_v57 = vmax.f32 %v2450_v51, 0.0  ;;  %v2642_v58 = vmax.f32 %v2514_v52, 0.0 }
 0x139   : > { %v3966_v59 = vpack.c.bf16 %v2578_v57, %v2577_v55  ;;  %v4126_v60 = vpack.c.bf16 %v2642_v58, %v2641_v56 }
 0x13a   : > { %v1582_v62 = vpop.f32.mrb[24].mxu0  ;;  %v1838_v63 = vpop.f32.mrb[24].mxu1 }
 0x13b   : > { %4262 = vst [vmem:[%s4983_s18 + $0x28] sm:$0xff] %v3966_v59   ;;  %4294 = vst [vmem:[%s4983_s18 + $0x128] sm:$0xff] %v4126_v60   ;;  %v2451_v0 = vadd.f32 %v4966_v61, %v1582_v62  ;;  %v2515_v1 = vadd.f32 %v4966_v61, %v1838_v63  ;;  %v1584_v2 = vpop.f32.mrb[25].mxu0  ;;  %v1840_v3 = vpop.f32.mrb[25].mxu1 }
 0x13c   : > { %v1585_v4 = vpop.f32.mrb[26].mxu0  ;;  %v1841_v5 = vpop.f32.mrb[26].mxu1 }
 0x13d   : > { %v2452_v6 = vadd.f32 %v4966_v61, %v1585_v4  ;;  %v2516_v7 = vadd.f32 %v4966_v61, %v1841_v5  ;;  %v1587_v8 = vpop.f32.mrb[27].mxu0  ;;  %v1843_v9 = vpop.f32.mrb[27].mxu1  ;;  %v2579_v10 = vmax.f32 %v2451_v0, 0.0  ;;  %v2643_v11 = vmax.f32 %v2515_v1, 0.0 }
 0x13f   : > { %v2580_v12 = vmax.f32 %v2452_v6, 0.0  ;;  %v2644_v13 = vmax.f32 %v2516_v7, 0.0 }
 0x141   : > { %v3971_v14 = vpack.c.bf16 %v2580_v12, %v2579_v10  ;;  %v4131_v15 = vpack.c.bf16 %v2644_v13, %v2643_v11 }
 0x142   : > { %v1590_v16 = vpop.f32.mrb[28].mxu0  ;;  %v1846_v17 = vpop.f32.mrb[28].mxu1 }
 0x143   : > { %4263 = vst [vmem:[%s4983_s18 + $0x30] sm:$0xff] %v3971_v14   ;;  %4295 = vst [vmem:[%s4983_s18 + $0x130] sm:$0xff] %v4131_v15   ;;  %v2453_v18 = vadd.f32 %v4966_v61, %v1590_v16  ;;  %v2517_v19 = vadd.f32 %v4966_v61, %v1846_v17  ;;  %v1592_v20 = vpop.f32.mrb[29].mxu0  ;;  %v1848_v21 = vpop.f32.mrb[29].mxu1 }
 0x144   : > { %v1593_v22 = vpop.f32.mrb[30].mxu0  ;;  %v1849_v23 = vpop.f32.mrb[30].mxu1 }
 0x145   : > { %v2454_v24 = vadd.f32 %v4966_v61, %v1593_v22  ;;  %v2518_v25 = vadd.f32 %v4966_v61, %v1849_v23  ;;  %v1595_v26 = vpop.f32.mrb[31].mxu0  ;;  %v1851_v27 = vpop.f32.mrb[31].mxu1  ;;  %v2581_v28 = vmax.f32 %v2453_v18, 0.0  ;;  %v2645_v29 = vmax.f32 %v2517_v19, 0.0 }
 0x147   : > { %v2582_v30 = vmax.f32 %v2454_v24, 0.0  ;;  %v2646_v31 = vmax.f32 %v2518_v25, 0.0 }
 0x149   : > { %v3976_v32 = vpack.c.bf16 %v2582_v30, %v2581_v28  ;;  %v4136_v33 = vpack.c.bf16 %v2646_v31, %v2645_v29 }
 0x14a   : > { %v1598_v34 = vpop.f32.mrb[32].mxu0  ;;  %v1854_v35 = vpop.f32.mrb[32].mxu1 }
 0x14b   : > { %4264 = vst [vmem:[%s4983_s18 + $0x38] sm:$0xff] %v3976_v32   ;;  %4296 = vst [vmem:[%s4983_s18 + $0x138] sm:$0xff] %v4136_v33   ;;  %v2455_v36 = vadd.f32 %v4966_v61, %v1598_v34  ;;  %v2519_v37 = vadd.f32 %v4966_v61, %v1854_v35  ;;  %v1600_v38 = vpop.f32.mrb[33].mxu0  ;;  %v1856_v39 = vpop.f32.mrb[33].mxu1 }
 0x14c   : > { %v1601_v40 = vpop.f32.mrb[34].mxu0  ;;  %v1857_v41 = vpop.f32.mrb[34].mxu1 }
 0x14d   : > { %v2456_v42 = vadd.f32 %v4966_v61, %v1601_v40  ;;  %v2520_v43 = vadd.f32 %v4966_v61, %v1857_v41  ;;  %v1603_v44 = vpop.f32.mrb[35].mxu0  ;;  %v1859_v45 = vpop.f32.mrb[35].mxu1  ;;  %v2583_v46 = vmax.f32 %v2455_v36, 0.0  ;;  %v2647_v47 = vmax.f32 %v2519_v37, 0.0 }
 0x14f   : > { %v2584_v48 = vmax.f32 %v2456_v42, 0.0  ;;  %v2648_v49 = vmax.f32 %v2520_v43, 0.0 }
 0x151   : > { %v3981_v50 = vpack.c.bf16 %v2584_v48, %v2583_v46  ;;  %v4141_v51 = vpack.c.bf16 %v2648_v49, %v2647_v47 }
 0x152   : > { %v1606_v52 = vpop.f32.mrb[36].mxu0  ;;  %v1862_v53 = vpop.f32.mrb[36].mxu1 }
 0x153   : > { %4265 = vst [vmem:[%s4983_s18 + $0x40] sm:$0xff] %v3981_v50   ;;  %4297 = vst [vmem:[%s4983_s18 + $0x140] sm:$0xff] %v4141_v51   ;;  %v2457_v54 = vadd.f32 %v4966_v61, %v1606_v52  ;;  %v2521_v55 = vadd.f32 %v4966_v61, %v1862_v53  ;;  %v1608_v56 = vpop.f32.mrb[37].mxu0  ;;  %v1864_v57 = vpop.f32.mrb[37].mxu1 }
 0x154   : > { %v1609_v58 = vpop.f32.mrb[38].mxu0  ;;  %v1865_v59 = vpop.f32.mrb[38].mxu1 }
 0x155   : > { %v2458_v60 = vadd.f32 %v4966_v61, %v1609_v58  ;;  %v2522_v62 = vadd.f32 %v4966_v61, %v1865_v59  ;;  %v1611_v63 = vpop.f32.mrb[39].mxu0  ;;  %v1867_v0 = vpop.f32.mrb[39].mxu1  ;;  %v2585_v1 = vmax.f32 %v2457_v54, 0.0  ;;  %v2649_v2 = vmax.f32 %v2521_v55, 0.0 }
 0x157   : > { %v2586_v3 = vmax.f32 %v2458_v60, 0.0  ;;  %v2650_v4 = vmax.f32 %v2522_v62, 0.0 }
 0x159   : > { %v3986_v5 = vpack.c.bf16 %v2586_v3, %v2585_v1  ;;  %v4146_v6 = vpack.c.bf16 %v2650_v4, %v2649_v2 }
 0x15a   : > { %v1614_v7 = vpop.f32.mrb[40].mxu0  ;;  %v1870_v8 = vpop.f32.mrb[40].mxu1 }
 0x15b   : > { %4266 = vst [vmem:[%s4983_s18 + $0x48] sm:$0xff] %v3986_v5   ;;  %4298 = vst [vmem:[%s4983_s18 + $0x148] sm:$0xff] %v4146_v6   ;;  %v2459_v9 = vadd.f32 %v4966_v61, %v1614_v7  ;;  %v2523_v10 = vadd.f32 %v4966_v61, %v1870_v8  ;;  %v1616_v11 = vpop.f32.mrb[41].mxu0  ;;  %v1872_v12 = vpop.f32.mrb[41].mxu1 }
 0x15c   : > { %v1617_v13 = vpop.f32.mrb[42].mxu0  ;;  %v1873_v14 = vpop.f32.mrb[42].mxu1 }
 0x15d   : > { %v2460_v15 = vadd.f32 %v4966_v61, %v1617_v13  ;;  %v2524_v16 = vadd.f32 %v4966_v61, %v1873_v14  ;;  %v1619_v17 = vpop.f32.mrb[43].mxu0  ;;  %v1875_v18 = vpop.f32.mrb[43].mxu1  ;;  %v2587_v19 = vmax.f32 %v2459_v9, 0.0  ;;  %v2651_v20 = vmax.f32 %v2523_v10, 0.0 }
 0x15f   : > { %v2588_v21 = vmax.f32 %v2460_v15, 0.0  ;;  %v2652_v22 = vmax.f32 %v2524_v16, 0.0 }
 0x161   : > { %v3991_v23 = vpack.c.bf16 %v2588_v21, %v2587_v19  ;;  %v4151_v24 = vpack.c.bf16 %v2652_v22, %v2651_v20 }
 0x162   : > { %v1622_v25 = vpop.f32.mrb[44].mxu0  ;;  %v1878_v26 = vpop.f32.mrb[44].mxu1 }
 0x163   : > { %4267 = vst [vmem:[%s4983_s18 + $0x50] sm:$0xff] %v3991_v23   ;;  %4299 = vst [vmem:[%s4983_s18 + $0x150] sm:$0xff] %v4151_v24   ;;  %v2461_v27 = vadd.f32 %v4966_v61, %v1622_v25  ;;  %v2525_v28 = vadd.f32 %v4966_v61, %v1878_v26  ;;  %v1624_v29 = vpop.f32.mrb[45].mxu0  ;;  %v1880_v30 = vpop.f32.mrb[45].mxu1 }
 0x164   : > { %v1625_v31 = vpop.f32.mrb[46].mxu0  ;;  %v1881_v32 = vpop.f32.mrb[46].mxu1 }
 0x165   : > { %v2462_v33 = vadd.f32 %v4966_v61, %v1625_v31  ;;  %v2526_v34 = vadd.f32 %v4966_v61, %v1881_v32  ;;  %v1627_v35 = vpop.f32.mrb[47].mxu0  ;;  %v1883_v36 = vpop.f32.mrb[47].mxu1  ;;  %v2589_v37 = vmax.f32 %v2461_v27, 0.0  ;;  %v2653_v38 = vmax.f32 %v2525_v28, 0.0 }
 0x167   : > { %v2590_v39 = vmax.f32 %v2462_v33, 0.0  ;;  %v2654_v40 = vmax.f32 %v2526_v34, 0.0 }
 0x169   : > { %v3996_v41 = vpack.c.bf16 %v2590_v39, %v2589_v37  ;;  %v4156_v42 = vpack.c.bf16 %v2654_v40, %v2653_v38 }
 0x16a   : > { %v1630_v43 = vpop.f32.mrb[48].mxu0  ;;  %v1886_v44 = vpop.f32.mrb[48].mxu1 }
 0x16b   : > { %4268 = vst [vmem:[%s4983_s18 + $0x58] sm:$0xff] %v3996_v41   ;;  %4300 = vst [vmem:[%s4983_s18 + $0x158] sm:$0xff] %v4156_v42   ;;  %v2463_v45 = vadd.f32 %v4966_v61, %v1630_v43  ;;  %v2527_v46 = vadd.f32 %v4966_v61, %v1886_v44  ;;  %v1632_v47 = vpop.f32.mrb[49].mxu0  ;;  %v1888_v48 = vpop.f32.mrb[49].mxu1 }
 0x16c   : > { %v1633_v49 = vpop.f32.mrb[50].mxu0  ;;  %v1889_v50 = vpop.f32.mrb[50].mxu1 }
 0x16d   : > { %v2464_v51 = vadd.f32 %v4966_v61, %v1633_v49  ;;  %v2528_v52 = vadd.f32 %v4966_v61, %v1889_v50  ;;  %v1635_v53 = vpop.f32.mrb[51].mxu0  ;;  %v1891_v54 = vpop.f32.mrb[51].mxu1  ;;  %v2591_v55 = vmax.f32 %v2463_v45, 0.0  ;;  %v2655_v56 = vmax.f32 %v2527_v46, 0.0 }
 0x16f   : > { %v2592_v57 = vmax.f32 %v2464_v51, 0.0  ;;  %v2656_v58 = vmax.f32 %v2528_v52, 0.0 }
 0x171   : > { %v4001_v59 = vpack.c.bf16 %v2592_v57, %v2591_v55  ;;  %v4161_v60 = vpack.c.bf16 %v2656_v58, %v2655_v56 }
 0x172   : > { %v1638_v62 = vpop.f32.mrb[52].mxu0  ;;  %v1894_v63 = vpop.f32.mrb[52].mxu1 }
 0x173   : > { %4269 = vst [vmem:[%s4983_s18 + $0x60] sm:$0xff] %v4001_v59   ;;  %4301 = vst [vmem:[%s4983_s18 + $0x160] sm:$0xff] %v4161_v60   ;;  %v2465_v0 = vadd.f32 %v4966_v61, %v1638_v62  ;;  %v2529_v1 = vadd.f32 %v4966_v61, %v1894_v63  ;;  %v1640_v2 = vpop.f32.mrb[53].mxu0  ;;  %v1896_v3 = vpop.f32.mrb[53].mxu1 }
 0x174   : > { %v1641_v4 = vpop.f32.mrb[54].mxu0  ;;  %v1897_v5 = vpop.f32.mrb[54].mxu1 }
 0x175   : > { %v2466_v6 = vadd.f32 %v4966_v61, %v1641_v4  ;;  %v2530_v7 = vadd.f32 %v4966_v61, %v1897_v5  ;;  %v1643_v8 = vpop.f32.mrb[55].mxu0  ;;  %v1899_v9 = vpop.f32.mrb[55].mxu1  ;;  %v2593_v10 = vmax.f32 %v2465_v0, 0.0  ;;  %v2657_v11 = vmax.f32 %v2529_v1, 0.0 }
 0x177   : > { %v2594_v12 = vmax.f32 %v2466_v6, 0.0  ;;  %v2658_v13 = vmax.f32 %v2530_v7, 0.0 }
 0x179   : > { %v4006_v14 = vpack.c.bf16 %v2594_v12, %v2593_v10  ;;  %v4166_v15 = vpack.c.bf16 %v2658_v13, %v2657_v11 }
 0x17a   : > { %v1646_v16 = vpop.f32.mrb[56].mxu0  ;;  %v1902_v17 = vpop.f32.mrb[56].mxu1 }
 0x17b   : > { %4270 = vst [vmem:[%s4983_s18 + $0x68] sm:$0xff] %v4006_v14   ;;  %4302 = vst [vmem:[%s4983_s18 + $0x168] sm:$0xff] %v4166_v15   ;;  %v2467_v18 = vadd.f32 %v4966_v61, %v1646_v16  ;;  %v2531_v19 = vadd.f32 %v4966_v61, %v1902_v17  ;;  %v1648_v20 = vpop.f32.mrb[57].mxu0  ;;  %v1904_v21 = vpop.f32.mrb[57].mxu1 }
 0x17c   : > { %v1649_v22 = vpop.f32.mrb[58].mxu0  ;;  %v1905_v23 = vpop.f32.mrb[58].mxu1 }
 0x17d   : > { %v2468_v24 = vadd.f32 %v4966_v61, %v1649_v22  ;;  %v2532_v25 = vadd.f32 %v4966_v61, %v1905_v23  ;;  %v1651_v26 = vpop.f32.mrb[59].mxu0  ;;  %v1907_v27 = vpop.f32.mrb[59].mxu1  ;;  %v2595_v28 = vmax.f32 %v2467_v18, 0.0  ;;  %v2659_v29 = vmax.f32 %v2531_v19, 0.0 }
 0x17f   : > { %v2596_v30 = vmax.f32 %v2468_v24, 0.0  ;;  %v2660_v31 = vmax.f32 %v2532_v25, 0.0 }
 0x181   : > { %v4011_v32 = vpack.c.bf16 %v2596_v30, %v2595_v28  ;;  %v4171_v33 = vpack.c.bf16 %v2660_v31, %v2659_v29 }
 0x182   : > { %v1654_v34 = vpop.f32.mrb[60].mxu0  ;;  %v1910_v35 = vpop.f32.mrb[60].mxu1 }
 0x183   : > { %4271 = vst [vmem:[%s4983_s18 + $0x70] sm:$0xff] %v4011_v32   ;;  %4303 = vst [vmem:[%s4983_s18 + $0x170] sm:$0xff] %v4171_v33   ;;  %v2469_v36 = vadd.f32 %v4966_v61, %v1654_v34  ;;  %v2533_v37 = vadd.f32 %v4966_v61, %v1910_v35  ;;  %v1656_v38 = vpop.f32.mrb[61].mxu0  ;;  %v1912_v39 = vpop.f32.mrb[61].mxu1 }
 0x184   : > { %v1657_v40 = vpop.f32.mrb[62].mxu0  ;;  %v1913_v41 = vpop.f32.mrb[62].mxu1 }
 0x185   : > { %v2470_v42 = vadd.f32 %v4966_v61, %v1657_v40  ;;  %v2534_v43 = vadd.f32 %v4966_v61, %v1913_v41  ;;  %v1659_v44 = vpop.f32.mrb[63].mxu0  ;;  %v1915_v45 = vpop.f32.mrb[63].mxu1  ;;  %v2597_v46 = vmax.f32 %v2469_v36, 0.0  ;;  %v2661_v47 = vmax.f32 %v2533_v37, 0.0 }
 0x187   : > { %v2598_v48 = vmax.f32 %v2470_v42, 0.0  ;;  %v2662_v49 = vmax.f32 %v2534_v43, 0.0 }
 0x189   : > { %v4016_v50 = vpack.c.bf16 %v2598_v48, %v2597_v46  ;;  %v4176_v51 = vpack.c.bf16 %v2662_v49, %v2661_v47 }
 0x18a   : > { %v1662_v52 = vpop.f32.mrb[64].mxu0  ;;  %v1918_v53 = vpop.f32.mrb[64].mxu1 }
 0x18b   : > { %4272 = vst [vmem:[%s4983_s18 + $0x78] sm:$0xff] %v4016_v50   ;;  %4304 = vst [vmem:[%s4983_s18 + $0x178] sm:$0xff] %v4176_v51   ;;  %v2471_v54 = vadd.f32 %v4966_v61, %v1662_v52  ;;  %v2535_v55 = vadd.f32 %v4966_v61, %v1918_v53  ;;  %v1664_v56 = vpop.f32.mrb[65].mxu0  ;;  %v1920_v57 = vpop.f32.mrb[65].mxu1 }
 0x18c   : > { %v1665_v58 = vpop.f32.mrb[66].mxu0  ;;  %v1921_v59 = vpop.f32.mrb[66].mxu1 }
 0x18d   : > { %v2472_v60 = vadd.f32 %v4966_v61, %v1665_v58  ;;  %v2536_v62 = vadd.f32 %v4966_v61, %v1921_v59  ;;  %v1667_v63 = vpop.f32.mrb[67].mxu0  ;;  %v1923_v0 = vpop.f32.mrb[67].mxu1  ;;  %v2599_v1 = vmax.f32 %v2471_v54, 0.0  ;;  %v2663_v2 = vmax.f32 %v2535_v55, 0.0 }
 0x18f   : > { %v2600_v3 = vmax.f32 %v2472_v60, 0.0  ;;  %v2664_v4 = vmax.f32 %v2536_v62, 0.0 }
 0x191   : > { %v4021_v5 = vpack.c.bf16 %v2600_v3, %v2599_v1  ;;  %v4181_v6 = vpack.c.bf16 %v2664_v4, %v2663_v2 }
 0x192   : > { %v1670_v7 = vpop.f32.mrb[68].mxu0  ;;  %v1926_v8 = vpop.f32.mrb[68].mxu1 }
 0x193   : > { %4273 = vst [vmem:[%s4983_s18 + $0x80] sm:$0xff] %v4021_v5   ;;  %4305 = vst [vmem:[%s4983_s18 + $0x180] sm:$0xff] %v4181_v6   ;;  %v2473_v9 = vadd.f32 %v4966_v61, %v1670_v7  ;;  %v2537_v10 = vadd.f32 %v4966_v61, %v1926_v8  ;;  %v1672_v11 = vpop.f32.mrb[69].mxu0  ;;  %v1928_v12 = vpop.f32.mrb[69].mxu1 }
 0x194   : > { %v1673_v13 = vpop.f32.mrb[70].mxu0  ;;  %v1929_v14 = vpop.f32.mrb[70].mxu1 }
 0x195   : > { %v2474_v15 = vadd.f32 %v4966_v61, %v1673_v13  ;;  %v2538_v16 = vadd.f32 %v4966_v61, %v1929_v14  ;;  %v1675_v17 = vpop.f32.mrb[71].mxu0  ;;  %v1931_v18 = vpop.f32.mrb[71].mxu1  ;;  %v2601_v19 = vmax.f32 %v2473_v9, 0.0  ;;  %v2665_v20 = vmax.f32 %v2537_v10, 0.0 }
 0x197   : > { %v2602_v21 = vmax.f32 %v2474_v15, 0.0  ;;  %v2666_v22 = vmax.f32 %v2538_v16, 0.0 }
 0x199   : > { %v4026_v23 = vpack.c.bf16 %v2602_v21, %v2601_v19  ;;  %v4186_v24 = vpack.c.bf16 %v2666_v22, %v2665_v20 }
 0x19a   : > { %v1678_v25 = vpop.f32.mrb[72].mxu0  ;;  %v1934_v26 = vpop.f32.mrb[72].mxu1 }
 0x19b   : > { %4274 = vst [vmem:[%s4983_s18 + $0x88] sm:$0xff] %v4026_v23   ;;  %4306 = vst [vmem:[%s4983_s18 + $0x188] sm:$0xff] %v4186_v24   ;;  %v2475_v27 = vadd.f32 %v4966_v61, %v1678_v25  ;;  %v2539_v28 = vadd.f32 %v4966_v61, %v1934_v26  ;;  %v1680_v29 = vpop.f32.mrb[73].mxu0  ;;  %v1936_v30 = vpop.f32.mrb[73].mxu1 }
 0x19c   : > { %v1681_v31 = vpop.f32.mrb[74].mxu0  ;;  %v1937_v32 = vpop.f32.mrb[74].mxu1 }
 0x19d   : > { %v2476_v33 = vadd.f32 %v4966_v61, %v1681_v31  ;;  %v2540_v34 = vadd.f32 %v4966_v61, %v1937_v32  ;;  %v1683_v35 = vpop.f32.mrb[75].mxu0  ;;  %v1939_v36 = vpop.f32.mrb[75].mxu1  ;;  %v2603_v37 = vmax.f32 %v2475_v27, 0.0  ;;  %v2667_v38 = vmax.f32 %v2539_v28, 0.0 }
 0x19f   : > { %v2604_v39 = vmax.f32 %v2476_v33, 0.0  ;;  %v2668_v40 = vmax.f32 %v2540_v34, 0.0 }
 0x1a1   : > { %v4031_v41 = vpack.c.bf16 %v2604_v39, %v2603_v37  ;;  %v4191_v42 = vpack.c.bf16 %v2668_v40, %v2667_v38 }
 0x1a2   : > { %v1686_v43 = vpop.f32.mrb[76].mxu0  ;;  %v1942_v44 = vpop.f32.mrb[76].mxu1 }
 0x1a3   : > { %4275 = vst [vmem:[%s4983_s18 + $0x90] sm:$0xff] %v4031_v41   ;;  %4307 = vst [vmem:[%s4983_s18 + $0x190] sm:$0xff] %v4191_v42   ;;  %v2477_v45 = vadd.f32 %v4966_v61, %v1686_v43  ;;  %v2541_v46 = vadd.f32 %v4966_v61, %v1942_v44  ;;  %v1688_v47 = vpop.f32.mrb[77].mxu0  ;;  %v1944_v48 = vpop.f32.mrb[77].mxu1 }
 0x1a4   : > { %v1689_v49 = vpop.f32.mrb[78].mxu0  ;;  %v1945_v50 = vpop.f32.mrb[78].mxu1 }
 0x1a5   : > { %v2478_v51 = vadd.f32 %v4966_v61, %v1689_v49  ;;  %v2542_v52 = vadd.f32 %v4966_v61, %v1945_v50  ;;  %v1691_v53 = vpop.f32.mrb[79].mxu0  ;;  %v1947_v54 = vpop.f32.mrb[79].mxu1  ;;  %v2605_v55 = vmax.f32 %v2477_v45, 0.0  ;;  %v2669_v56 = vmax.f32 %v2541_v46, 0.0 }
 0x1a7   : > { %v2606_v57 = vmax.f32 %v2478_v51, 0.0  ;;  %v2670_v58 = vmax.f32 %v2542_v52, 0.0 }
 0x1a9   : > { %v4036_v59 = vpack.c.bf16 %v2606_v57, %v2605_v55  ;;  %v4196_v60 = vpack.c.bf16 %v2670_v58, %v2669_v56 }
 0x1aa   : > { %v1694_v62 = vpop.f32.mrb[80].mxu0  ;;  %v1950_v63 = vpop.f32.mrb[80].mxu1 }
 0x1ab   : > { %4276 = vst [vmem:[%s4983_s18 + $0x98] sm:$0xff] %v4036_v59   ;;  %4308 = vst [vmem:[%s4983_s18 + $0x198] sm:$0xff] %v4196_v60   ;;  %v2479_v0 = vadd.f32 %v4966_v61, %v1694_v62  ;;  %v2543_v1 = vadd.f32 %v4966_v61, %v1950_v63  ;;  %v1696_v2 = vpop.f32.mrb[81].mxu0  ;;  %v1952_v3 = vpop.f32.mrb[81].mxu1 }
 0x1ac   : > { %v1697_v4 = vpop.f32.mrb[82].mxu0  ;;  %v1953_v5 = vpop.f32.mrb[82].mxu1 }
 0x1ad   : > { %v2480_v6 = vadd.f32 %v4966_v61, %v1697_v4  ;;  %v2544_v7 = vadd.f32 %v4966_v61, %v1953_v5  ;;  %v1699_v8 = vpop.f32.mrb[83].mxu0  ;;  %v1955_v9 = vpop.f32.mrb[83].mxu1  ;;  %v2607_v10 = vmax.f32 %v2479_v0, 0.0  ;;  %v2671_v11 = vmax.f32 %v2543_v1, 0.0 }
 0x1ae   : > { %v5148_v9 = vld [vmem:[%s5257_s2] ss:$0 sm:$0xff] }
 0x1af   : > { %v2608_v12 = vmax.f32 %v2480_v6, 0.0  ;;  %v2672_v13 = vmax.f32 %v2544_v7, 0.0 }
 0x1b1   : > { %v4041_v14 = vpack.c.bf16 %v2608_v12, %v2607_v10  ;;  %v4201_v15 = vpack.c.bf16 %v2672_v13, %v2671_v11 }
 0x1b2   : > { %v1702_v16 = vpop.f32.mrb[84].mxu0  ;;  %v1958_v17 = vpop.f32.mrb[84].mxu1 }
 0x1b3   : > { %4277 = vst [vmem:[%s4983_s18 + $0xa0] sm:$0xff] %v4041_v14   ;;  %4309 = vst [vmem:[%s4983_s18 + $0x1a0] sm:$0xff] %v4201_v15   ;;  %v2481_v18 = vadd.f32 %v4966_v61, %v1702_v16  ;;  %v2545_v19 = vadd.f32 %v4966_v61, %v1958_v17  ;;  %v1704_v20 = vpop.f32.mrb[85].mxu0  ;;  %v1960_v21 = vpop.f32.mrb[85].mxu1 }
 0x1b4   : > { %v1705_v22 = vpop.f32.mrb[86].mxu0  ;;  %v1961_v23 = vpop.f32.mrb[86].mxu1 }
 0x1b5   : > { %v2482_v24 = vadd.f32 %v4966_v61, %v1705_v22  ;;  %v2546_v25 = vadd.f32 %v4966_v61, %v1961_v23  ;;  %v1707_v26 = vpop.f32.mrb[87].mxu0  ;;  %v1963_v27 = vpop.f32.mrb[87].mxu1  ;;  %v2609_v28 = vmax.f32 %v2481_v18, 0.0  ;;  %v2673_v29 = vmax.f32 %v2545_v19, 0.0 }
 0x1b7   : > { %v2610_v30 = vmax.f32 %v2482_v24, 0.0  ;;  %v2674_v31 = vmax.f32 %v2546_v25, 0.0 }
 0x1b9   : > { %v4046_v32 = vpack.c.bf16 %v2610_v30, %v2609_v28  ;;  %v4206_v33 = vpack.c.bf16 %v2674_v31, %v2673_v29 }
 0x1ba   : > { %v1710_v34 = vpop.f32.mrb[88].mxu0  ;;  %v1966_v35 = vpop.f32.mrb[88].mxu1 }
 0x1bb   : > { %4278 = vst [vmem:[%s4983_s18 + $0xa8] sm:$0xff] %v4046_v32   ;;  %4310 = vst [vmem:[%s4983_s18 + $0x1a8] sm:$0xff] %v4206_v33   ;;  %v2483_v36 = vadd.f32 %v4966_v61, %v1710_v34  ;;  %v2547_v37 = vadd.f32 %v4966_v61, %v1966_v35  ;;  %v1712_v38 = vpop.f32.mrb[89].mxu0  ;;  %v1968_v39 = vpop.f32.mrb[89].mxu1 }
 0x1bc   : > { %v1713_v40 = vpop.f32.mrb[90].mxu0  ;;  %v1969_v41 = vpop.f32.mrb[90].mxu1 }
 0x1bd   : > { %v2484_v42 = vadd.f32 %v4966_v61, %v1713_v40  ;;  %v2548_v43 = vadd.f32 %v4966_v61, %v1969_v41  ;;  %v1715_v44 = vpop.f32.mrb[91].mxu0  ;;  %v1971_v45 = vpop.f32.mrb[91].mxu1  ;;  %v2611_v46 = vmax.f32 %v2483_v36, 0.0  ;;  %v2675_v47 = vmax.f32 %v2547_v37, 0.0 }
 0x1bf   : > { %v2612_v48 = vmax.f32 %v2484_v42, 0.0  ;;  %v2676_v49 = vmax.f32 %v2548_v43, 0.0 }
 0x1c1   : > { %v4051_v50 = vpack.c.bf16 %v2612_v48, %v2611_v46  ;;  %v4211_v51 = vpack.c.bf16 %v2676_v49, %v2675_v47 }
 0x1c2   : > { %v1718_v52 = vpop.f32.mrb[92].mxu0  ;;  %v1974_v53 = vpop.f32.mrb[92].mxu1 }
 0x1c3   : > { %4279 = vst [vmem:[%s4983_s18 + $0xb0] sm:$0xff] %v4051_v50   ;;  %4311 = vst [vmem:[%s4983_s18 + $0x1b0] sm:$0xff] %v4211_v51   ;;  %v2485_v54 = vadd.f32 %v4966_v61, %v1718_v52  ;;  %v2549_v55 = vadd.f32 %v4966_v61, %v1974_v53  ;;  %v1720_v56 = vpop.f32.mrb[93].mxu0  ;;  %v1976_v57 = vpop.f32.mrb[93].mxu1 }
 0x1c4   : > { %v1721_v58 = vpop.f32.mrb[94].mxu0  ;;  %v1977_v59 = vpop.f32.mrb[94].mxu1 }
 0x1c5   : > { %v2486_v60 = vadd.f32 %v4966_v61, %v1721_v58  ;;  %v2550_v62 = vadd.f32 %v4966_v61, %v1977_v59  ;;  %v1723_v63 = vpop.f32.mrb[95].mxu0  ;;  %v1979_v0 = vpop.f32.mrb[95].mxu1  ;;  %v2613_v1 = vmax.f32 %v2485_v54, 0.0  ;;  %v2677_v2 = vmax.f32 %v2549_v55, 0.0 }
 0x1c7   : > { %v2614_v3 = vmax.f32 %v2486_v60, 0.0  ;;  %v2678_v4 = vmax.f32 %v2550_v62, 0.0 }
 0x1c9   : > { %v4056_v5 = vpack.c.bf16 %v2614_v3, %v2613_v1  ;;  %v4216_v6 = vpack.c.bf16 %v2678_v4, %v2677_v2 }
 0x1ca   : > { %v1726_v7 = vpop.f32.mrb[96].mxu0  ;;  %v1982_v8 = vpop.f32.mrb[96].mxu1 }
 0x1cb   : > { %4280 = vst [vmem:[%s4983_s18 + $0xb8] sm:$0xff] %v4056_v5   ;;  %4312 = vst [vmem:[%s4983_s18 + $0x1b8] sm:$0xff] %v4216_v6   ;;  %v2487_v10 = vadd.f32 %v5148_v9, %v1726_v7  ;;  %v2551_v61 = vadd.f32 %v5148_v9, %v1982_v8  ;;  %v1728_v11 = vpop.f32.mrb[97].mxu0  ;;  %v1984_v12 = vpop.f32.mrb[97].mxu1 }
 0x1cc   : > { %v1729_v13 = vpop.f32.mrb[98].mxu0  ;;  %v1985_v14 = vpop.f32.mrb[98].mxu1 }
 0x1cd   : > { %v2488_v15 = vadd.f32 %v5148_v9, %v1729_v13  ;;  %v2552_v16 = vadd.f32 %v5148_v9, %v1985_v14  ;;  %v1731_v17 = vpop.f32.mrb[99].mxu0  ;;  %v1987_v18 = vpop.f32.mrb[99].mxu1  ;;  %v2615_v19 = vmax.f32 %v2487_v10, 0.0  ;;  %v2679_v20 = vmax.f32 %v2551_v61, 0.0 }
 0x1cf   : > { %v2616_v21 = vmax.f32 %v2488_v15, 0.0  ;;  %v2680_v22 = vmax.f32 %v2552_v16, 0.0 }
 0x1d1   : > { %v4061_v23 = vpack.c.bf16 %v2616_v21, %v2615_v19  ;;  %v4221_v24 = vpack.c.bf16 %v2680_v22, %v2679_v20 }
 0x1d2   : > { %v1734_v25 = vpop.f32.mrb[100].mxu0  ;;  %v1990_v26 = vpop.f32.mrb[100].mxu1 }
 0x1d3   : > { %4281 = vst [vmem:[%s4983_s18 + $0xc0] sm:$0xff] %v4061_v23   ;;  %4313 = vst [vmem:[%s4983_s18 + $0x1c0] sm:$0xff] %v4221_v24   ;;  %v2489_v27 = vadd.f32 %v5148_v9, %v1734_v25  ;;  %v2553_v28 = vadd.f32 %v5148_v9, %v1990_v26  ;;  %v1736_v29 = vpop.f32.mrb[101].mxu0  ;;  %v1992_v30 = vpop.f32.mrb[101].mxu1 }
 0x1d4   : > { %v1737_v31 = vpop.f32.mrb[102].mxu0  ;;  %v1993_v32 = vpop.f32.mrb[102].mxu1 }
 0x1d5   : > { %v2490_v33 = vadd.f32 %v5148_v9, %v1737_v31  ;;  %v2554_v34 = vadd.f32 %v5148_v9, %v1993_v32  ;;  %v1739_v35 = vpop.f32.mrb[103].mxu0  ;;  %v1995_v36 = vpop.f32.mrb[103].mxu1  ;;  %v2617_v37 = vmax.f32 %v2489_v27, 0.0  ;;  %v2681_v38 = vmax.f32 %v2553_v28, 0.0 }
 0x1d7   : > { %v2618_v39 = vmax.f32 %v2490_v33, 0.0  ;;  %v2682_v40 = vmax.f32 %v2554_v34, 0.0 }
 0x1d9   : > { %v4066_v41 = vpack.c.bf16 %v2618_v39, %v2617_v37  ;;  %v4226_v42 = vpack.c.bf16 %v2682_v40, %v2681_v38 }
 0x1da   : > { %v1742_v43 = vpop.f32.mrb[104].mxu0  ;;  %v1998_v44 = vpop.f32.mrb[104].mxu1 }
 0x1db   : > { %4282 = vst [vmem:[%s4983_s18 + $0xc8] sm:$0xff] %v4066_v41   ;;  %4314 = vst [vmem:[%s4983_s18 + $0x1c8] sm:$0xff] %v4226_v42   ;;  %v2491_v45 = vadd.f32 %v5148_v9, %v1742_v43  ;;  %v2555_v46 = vadd.f32 %v5148_v9, %v1998_v44  ;;  %v1744_v47 = vpop.f32.mrb[105].mxu0  ;;  %v2000_v48 = vpop.f32.mrb[105].mxu1 }
 0x1dc   : > { %v1745_v49 = vpop.f32.mrb[106].mxu0  ;;  %v2001_v50 = vpop.f32.mrb[106].mxu1 }
 0x1dd   : > { %v2492_v51 = vadd.f32 %v5148_v9, %v1745_v49  ;;  %v2556_v52 = vadd.f32 %v5148_v9, %v2001_v50  ;;  %v1747_v53 = vpop.f32.mrb[107].mxu0  ;;  %v2003_v54 = vpop.f32.mrb[107].mxu1  ;;  %v2619_v55 = vmax.f32 %v2491_v45, 0.0  ;;  %v2683_v56 = vmax.f32 %v2555_v46, 0.0 }
 0x1df   : > { %v2620_v57 = vmax.f32 %v2492_v51, 0.0  ;;  %v2684_v58 = vmax.f32 %v2556_v52, 0.0 }
 0x1e1   : > { %v4071_v59 = vpack.c.bf16 %v2620_v57, %v2619_v55  ;;  %v4231_v60 = vpack.c.bf16 %v2684_v58, %v2683_v56 }
 0x1e2   : > { %v1750_v62 = vpop.f32.mrb[108].mxu0  ;;  %v2006_v63 = vpop.f32.mrb[108].mxu1 }
 0x1e3   : > { %4283 = vst [vmem:[%s4983_s18 + $0xd0] sm:$0xff] %v4071_v59   ;;  %4315 = vst [vmem:[%s4983_s18 + $0x1d0] sm:$0xff] %v4231_v60   ;;  %v2493_v0 = vadd.f32 %v5148_v9, %v1750_v62  ;;  %v2557_v1 = vadd.f32 %v5148_v9, %v2006_v63  ;;  %v1752_v2 = vpop.f32.mrb[109].mxu0  ;;  %v2008_v3 = vpop.f32.mrb[109].mxu1 }
 0x1e4   : > { %v1753_v4 = vpop.f32.mrb[110].mxu0  ;;  %v2009_v5 = vpop.f32.mrb[110].mxu1 }
 0x1e5   : > { %v2494_v6 = vadd.f32 %v5148_v9, %v1753_v4  ;;  %v2558_v7 = vadd.f32 %v5148_v9, %v2009_v5  ;;  %v1755_v8 = vpop.f32.mrb[111].mxu0  ;;  %v2011_v10 = vpop.f32.mrb[111].mxu1  ;;  %v2621_v61 = vmax.f32 %v2493_v0, 0.0  ;;  %v2685_v11 = vmax.f32 %v2557_v1, 0.0 }
 0x1e7   : > { %v2622_v12 = vmax.f32 %v2494_v6, 0.0  ;;  %v2686_v13 = vmax.f32 %v2558_v7, 0.0 }
 0x1e9   : > { %v4076_v14 = vpack.c.bf16 %v2622_v12, %v2621_v61  ;;  %v4236_v15 = vpack.c.bf16 %v2686_v13, %v2685_v11 }
 0x1ea   : > { %v1758_v16 = vpop.f32.mrb[112].mxu0  ;;  %v2014_v17 = vpop.f32.mrb[112].mxu1 }
 0x1eb   : > { %4284 = vst [vmem:[%s4983_s18 + $0xd8] sm:$0xff] %v4076_v14   ;;  %4316 = vst [vmem:[%s4983_s18 + $0x1d8] sm:$0xff] %v4236_v15   ;;  %v2495_v18 = vadd.f32 %v5148_v9, %v1758_v16  ;;  %v2559_v19 = vadd.f32 %v5148_v9, %v2014_v17  ;;  %v1760_v20 = vpop.f32.mrb[113].mxu0  ;;  %v2016_v21 = vpop.f32.mrb[113].mxu1 }
 0x1ec   : > { %v1761_v22 = vpop.f32.mrb[114].mxu0  ;;  %v2017_v23 = vpop.f32.mrb[114].mxu1 }
 0x1ed   : > { %v2496_v24 = vadd.f32 %v5148_v9, %v1761_v22  ;;  %v2560_v25 = vadd.f32 %v5148_v9, %v2017_v23  ;;  %v1763_v26 = vpop.f32.mrb[115].mxu0  ;;  %v2019_v27 = vpop.f32.mrb[115].mxu1  ;;  %v2623_v28 = vmax.f32 %v2495_v18, 0.0  ;;  %v2687_v29 = vmax.f32 %v2559_v19, 0.0 }
 0x1ef   : > { %v2624_v30 = vmax.f32 %v2496_v24, 0.0  ;;  %v2688_v31 = vmax.f32 %v2560_v25, 0.0 }
 0x1f1   : > { %v4081_v32 = vpack.c.bf16 %v2624_v30, %v2623_v28  ;;  %v4241_v33 = vpack.c.bf16 %v2688_v31, %v2687_v29 }
 0x1f2   : > { %v1766_v34 = vpop.f32.mrb[116].mxu0  ;;  %v2022_v35 = vpop.f32.mrb[116].mxu1 }
 0x1f3   : > { %4285 = vst [vmem:[%s4983_s18 + $0xe0] sm:$0xff] %v4081_v32   ;;  %4317 = vst [vmem:[%s4983_s18 + $0x1e0] sm:$0xff] %v4241_v33   ;;  %v2497_v36 = vadd.f32 %v5148_v9, %v1766_v34  ;;  %v2561_v37 = vadd.f32 %v5148_v9, %v2022_v35  ;;  %v1768_v38 = vpop.f32.mrb[117].mxu0  ;;  %v2024_v39 = vpop.f32.mrb[117].mxu1 }
 0x1f4   : > { %v1769_v40 = vpop.f32.mrb[118].mxu0  ;;  %v2025_v41 = vpop.f32.mrb[118].mxu1 }
 0x1f5   : > { %v2498_v42 = vadd.f32 %v5148_v9, %v1769_v40  ;;  %v2562_v43 = vadd.f32 %v5148_v9, %v2025_v41  ;;  %v1771_v44 = vpop.f32.mrb[119].mxu0  ;;  %v2027_v45 = vpop.f32.mrb[119].mxu1  ;;  %v2625_v46 = vmax.f32 %v2497_v36, 0.0  ;;  %v2689_v47 = vmax.f32 %v2561_v37, 0.0 }
 0x1f7   : > { %v2626_v48 = vmax.f32 %v2498_v42, 0.0  ;;  %v2690_v49 = vmax.f32 %v2562_v43, 0.0 }
 0x1f9   : > { %v4086_v50 = vpack.c.bf16 %v2626_v48, %v2625_v46  ;;  %v4246_v51 = vpack.c.bf16 %v2690_v49, %v2689_v47 }
 0x1fa   : > { %v1774_v52 = vpop.f32.mrb[120].mxu0  ;;  %v2030_v53 = vpop.f32.mrb[120].mxu1 }
 0x1fb   : > { %4286 = vst [vmem:[%s4983_s18 + $0xe8] sm:$0xff] %v4086_v50   ;;  %4318 = vst [vmem:[%s4983_s18 + $0x1e8] sm:$0xff] %v4246_v51   ;;  %v2499_v54 = vadd.f32 %v5148_v9, %v1774_v52  ;;  %v2563_v55 = vadd.f32 %v5148_v9, %v2030_v53  ;;  %v1776_v56 = vpop.f32.mrb[121].mxu0  ;;  %v2032_v57 = vpop.f32.mrb[121].mxu1 }
 0x1fc   : > { %v1777_v58 = vpop.f32.mrb[122].mxu0  ;;  %v2033_v59 = vpop.f32.mrb[122].mxu1 }
 0x1fd   : > { %v2500_v60 = vadd.f32 %v5148_v9, %v1777_v58  ;;  %v2564_v62 = vadd.f32 %v5148_v9, %v2033_v59  ;;  %v1779_v63 = vpop.f32.mrb[123].mxu0  ;;  %v2035_v0 = vpop.f32.mrb[123].mxu1  ;;  %v2627_v1 = vmax.f32 %v2499_v54, 0.0  ;;  %v2691_v2 = vmax.f32 %v2563_v55, 0.0 }
 0x1ff   : > { %v2628_v3 = vmax.f32 %v2500_v60, 0.0  ;;  %v2692_v4 = vmax.f32 %v2564_v62, 0.0 }
 0x201   : > { %v4091_v5 = vpack.c.bf16 %v2628_v3, %v2627_v1  ;;  %v4251_v6 = vpack.c.bf16 %v2692_v4, %v2691_v2 }
 0x202   : > { %v1782_v7 = vpop.f32.mrb[124].mxu0  ;;  %v2038_v8 = vpop.f32.mrb[124].mxu1 }
 0x203   : > { %4287 = vst [vmem:[%s4983_s18 + $0xf0] sm:$0xff] %v4091_v5   ;;  %4319 = vst [vmem:[%s4983_s18 + $0x1f0] sm:$0xff] %v4251_v6   ;;  %v2501_v10 = vadd.f32 %v5148_v9, %v1782_v7  ;;  %v2565_v61 = vadd.f32 %v5148_v9, %v2038_v8  ;;  %v1784_v11 = vpop.f32.mrb[125].mxu0  ;;  %v2040_v12 = vpop.f32.mrb[125].mxu1 }
 0x204   : > { %v1785_v13 = vpop.f32.mrb[126].mxu0  ;;  %v2041_v14 = vpop.f32.mrb[126].mxu1 }
 0x205   : > { %v2502_v15 = vadd.f32 %v5148_v9, %v1785_v13  ;;  %v2566_v16 = vadd.f32 %v5148_v9, %v2041_v14  ;;  %v1787_v17 = vpop.f32.mrb[127].mxu0  ;;  %v2043_v18 = vpop.f32.mrb[127].mxu1  ;;  %v2629_v19 = vmax.f32 %v2501_v10, 0.0  ;;  %v2693_v20 = vmax.f32 %v2565_v61, 0.0 }
 0x207   : > { %v2630_v21 = vmax.f32 %v2502_v15, 0.0  ;;  %v2694_v22 = vmax.f32 %v2566_v16, 0.0 }
 0x209   : > { %v4096_v9 = vpack.c.bf16 %v2630_v21, %v2629_v19  ;;  %v4256_v23 = vpack.c.bf16 %v2694_v22, %v2693_v20 }
 0x20b   : > { %4288 = vst [vmem:[%s4983_s18 + $0xf8] sm:$0xff] %v4096_v9   ;;  %4320 = vst [vmem:[%s4983_s18 + $0x1f8] sm:$0xff] %v4256_v23  }
 0x20c   : > { %4616 = shalt.err (!%p4613_p5)
}
 0x20d   : > { %s4617_s6 = scalar_lea.hbm %s5201_s28, 8192  ;;  %s4621_s9 = scalar_lea.hbm %s5258_s3, 16384 }
 0x20e   : > { %p4618_p6 = scmp.ne.s32.totalorder %s5201_s28, %s4617_s6  ;;  %p4622_p10 = scmp.lt.u32.totalorder %s5201_s28, %s5258_s3 }
 0x20f   : > { %p4623_p11 = scmp.lt.u32.totalorder %s4621_s9, %s4617_s6  ;;  %p4625_p13 = scmp.lt.u32.totalorder %s4617_s6, %s5201_s28 }
 0x210   : > { %p4619_p7 = pnand %p4618_p6, %p4748_p4 }
 0x211   : > { %p4624_p12 = por %p4623_p11, %p4622_p10 }
 0x212   : > { %p4620_p9 = pneg %p4619_p7 }
 0x213   : > { %p4626_p0 = por %p4625_p13, %p4624_p12 }
 0x215   : > { %p4627_p1 = pnand %p4626_p0, %p4620_p9 }
 0x217   : > { %4630 = shalt.err (!%p4627_p1)
}
 0x218   : > { %s4686_s11 = smov 64   ;;  %s4687_s19 = smov 4  }
 0x219   : > { %4341 = dma.vmem_to_hbm [thread:$0]  (%p4748_p4), %s5203_s23, 8192, %s5201_s28, %s5209_s15, %s4686_s11, %s4686_s11, %s4687_s19  }
 0x21a PF: > { %p4347_p2 = scmp.ge.s32.totalorder %s4681_s17, 2  ;;  %s3365_s21 = sand.u32 1, %s4661_s12  }
 0x21b   : > { %s3366_s26 = scalar_lea.sflag [#allocation4], %s3365_s21 }
 0x21c   : > { %p4344_p3 = pnand %p4347_p2, %p4755_p8 }
 0x21e   : > { %4656 = dma.done.wait (!%p4344_p3), %s3366_s26, 8192  }
 0x21f   : > { %4658 = vsyncadd (!%p4344_p3), %s3366_s26, 4294959104  ;;  %s16_s17 = sadd.s32 1, %s4681_s17   ;;  %s5261_s12 = smov %s4665_s13 }
 0x220   : > { %p13_p5 = scmp.ge.s32.totalorder %s16_s17, 4   ;;  %s5262_s13 = smov %s4669_s14 }
 0x221   : > { %s5263_s14 = smov %s4761_s25  ;;  %s5264_s15 = smov %s4677_s16 }
 0x222   : > { %s5265_s16 = smov %s5267_s20  ;;  %15 = sbr.rel (!%p13_p5) target bundleno = 4 (0x4), region = 81 }
 0x229   :  { %3371 = vsyncpa [#allocation4], 1 }
 0x22a   :  { %3373 = vsyncpa [#allocation4 + $0x1], 1 }

</bundles_post_ra>
